<compile_context>
chip_gen: v7x
topology: tpu7x:2x2x1
jax: 0.10.0
libtpu: 0.0.40
codegen_flags: <defaults>
</compile_context>

<pallas_src>
import math
import functools

import numpy as np
import jax
import jax.numpy as jnp
from jax.experimental import pallas as pl
from jax.experimental.pallas import tpu as pltpu


def attention_block_kernel(x_ref, gamma_ref, beta_ref, gmat_ref,
                           wqkv_ref, wproj_ref, bproj_ref, o_ref,
                           *, num_heads, num_groups, eps,
                           compute_dtype, exp_dtype):
    x = x_ref[...].astype(jnp.float32)            # (L, C), channels-last
    L, C = x.shape
    cg = C // num_groups
    dh = C // num_heads
    inv_n = 1.0 / (cg * L)

    gmat = gmat_ref[...]                          # (C, C) 0/1 group indicator

    # ---- GroupNorm (two-pass, centered; no big-tile reshape) ----
    s1 = jnp.sum(x, axis=0, keepdims=True)                      # (1, C)
    g1 = jnp.dot(s1.astype(gmat.dtype), gmat,
                 preferred_element_type=jnp.float32)            # group-sum+bcast
    mean_c = g1 * inv_n                                          # (1, C)
    xc = x - mean_c                                              # centered
    s2 = jnp.sum(xc * xc, axis=0, keepdims=True)                 # (1, C)
    g2 = jnp.dot(s2.astype(gmat.dtype), gmat,
                 preferred_element_type=jnp.float32)
    var_c = g2 * inv_n
    scale_c = jax.lax.rsqrt(var_c + eps) * gamma_ref[...]
    xn = (xc * scale_c + beta_ref[...]).astype(compute_dtype)    # (L, C)

    # ---- qkv 1x1 conv: (L, C) @ (C, 3C); columns [Q | K | V], head-major,
    #      softmax scale already folded into the Q columns.  Cast to the
    #      compute dtype immediately so the f32 accumulator is not kept live.
    qkv = jnp.dot(xn, wqkv_ref[...],
                  preferred_element_type=jnp.float32).astype(compute_dtype)

    # ---- per-head attention; heads concatenated into one (L, C) slab ----
    heads = []
    for h in range(num_heads):                    # small static unroll
        q = qkv[:, h * dh:(h + 1) * dh]                        # (L, dh)
        k = qkv[:, C + h * dh:C + (h + 1) * dh]                # (L, dh)
        v = qkv[:, 2 * C + h * dh:2 * C + (h + 1) * dh]        # (L, dh)

        # scores[t, s] = sum_d q[t, d] * k[s, d]  (contract dh, no transpose)
        s = jax.lax.dot_general(q, k, (((1,), (1,)), ((), ())),
                                preferred_element_type=jnp.float32)   # (L, L)
        s = s - jnp.max(s, axis=-1, keepdims=True)
        p = jnp.exp(s.astype(exp_dtype))          # bf16 EUP on v6e/v7x
        denom = jnp.sum(p.astype(jnp.float32), axis=-1, keepdims=True)

        # un-normalized PV matmul, normalize the small (L, dh) result after
        oh = jnp.dot(p.astype(compute_dtype), v,
                     preferred_element_type=jnp.float32)              # (L, dh)
        oh = oh * pl.reciprocal(denom, approx=True)
        heads.append(oh.astype(compute_dtype))

    attn_out = jnp.concatenate(heads, axis=-1)    # (L, C), head-major

    # ---- single K=C projection, then bias + residual ----
    y = jnp.dot(attn_out, wproj_ref[...], preferred_element_type=jnp.float32)
    o_ref[...] = (x + bproj_ref[...] + y).astype(o_ref.dtype)


def _vmem_limit_bytes(L, C, num_heads, compute_itemsize):
    f32 = 4
    est = 0
    est += 2 * 2 * L * C * f32                                  # x / out tiles, double-buffered
    est += 2 * (3 * C * C + C * C + C * C) * compute_itemsize   # qkv + proj + gmat, double-buffered
    est += 2 * 4 * C * f32                                      # gamma / beta / bias
    est += L * 3 * C * (f32 + compute_itemsize)                 # qkv accumulator + compute copy
    est += L * L * (f32 + compute_itemsize)                     # one head's scores + probs
    est += 3 * L * C * f32                                      # xn / attn_out / y
    est = int(est * 1.5) + (4 << 20)                            # headroom

    try:
        info = pltpu.get_tpu_info()
        cap = int(getattr(info, "vmem_capacity_bytes", 0)) or (128 << 20)
    except Exception:
        cap = 128 << 20
    ceiling = (cap * 3) // 4                                    # leave 25% for compiler scratch
    return int(min(max(est, 16 << 20), ceiling))


def _default_exp_dtype(compute_dtype):
    """bf16 exp on chips with a bf16 EUP (v6e/v7x); f32 on v5e."""
    if jnp.dtype(compute_dtype) != jnp.dtype(jnp.bfloat16):
        return jnp.float32
    try:
        kind = jax.devices()[0].device_kind.lower()
    except Exception:
        kind = ""
    if "v5 lite" in kind or "v5e" in kind or "v5lite" in kind:
        return jnp.float32
    return jnp.bfloat16


def attention_block_cl(x_cl, gamma, beta, w_qkv, w_proj, b_proj,
                       *, num_heads=1, num_groups=32, eps=1e-5,
                       compute_dtype=jnp.bfloat16, exp_dtype=None):
    """Channels-last entry point: x_cl is (B, L, C)."""
    B, L, C = x_cl.shape
    assert C % num_groups == 0 and C % num_heads == 0
    dh = C // num_heads
    cg = C // num_groups
    if exp_dtype is None:
        exp_dtype = _default_exp_dtype(compute_dtype)

    # --- parameter prep (trace-time, outside the kernel) ---
    # Permute qkv output channels from per-head-interleaved [q_h,k_h,v_h] to
    # head-major [Q | K | V] so the kernel takes contiguous per-head slices.
    head = np.repeat(np.arange(num_heads), dh)
    inner = np.tile(np.arange(dh), num_heads)
    q_rows = head * 3 * dh + inner
    perm = np.concatenate([q_rows, q_rows + dh, q_rows + 2 * dh])
    w_perm = jnp.take(w_qkv, jnp.asarray(perm, dtype=jnp.int32), axis=0)  # (3C, C)
    # Fold the full softmax scale (1/sqrt(dh)) into the Q rows only.
    scale = 1.0 / math.sqrt(dh)
    row_scale = jnp.concatenate([jnp.full((C,), scale, jnp.float32),
                                 jnp.ones((2 * C,), jnp.float32)])
    w_perm = w_perm * row_scale[:, None]
    wqkv_t = w_perm.T.astype(compute_dtype)                 # (C, 3C)
    wproj_t = w_proj.T.astype(compute_dtype)                # (C, C)

    gamma2 = gamma.reshape(1, C).astype(jnp.float32)
    beta2 = beta.reshape(1, C).astype(jnp.float32)
    bproj2 = b_proj.reshape(1, C).astype(jnp.float32)

    ch = jnp.arange(C, dtype=jnp.int32)
    gmat = (ch[:, None] // cg == ch[None, :] // cg).astype(compute_dtype)  # (C, C) 0/1

    kernel = functools.partial(attention_block_kernel,
                               num_heads=num_heads,
                               num_groups=num_groups,
                               eps=eps,
                               compute_dtype=compute_dtype,
                               exp_dtype=exp_dtype)

    vmem_limit = _vmem_limit_bytes(L, C, num_heads,
                                   jnp.dtype(compute_dtype).itemsize)

    return pl.pallas_call(
        kernel,
        out_shape=jax.ShapeDtypeStruct((B, L, C), x_cl.dtype),
        grid=(B,),
        in_specs=[
            pl.BlockSpec((None, L, C), lambda b: (b, 0, 0)),   # x, one batch / step
            pl.BlockSpec((1, C), lambda b: (0, 0)),            # gamma
            pl.BlockSpec((1, C), lambda b: (0, 0)),            # beta
            pl.BlockSpec((C, C), lambda b: (0, 0)),            # group-indicator matrix
            pl.BlockSpec((C, 3 * C), lambda b: (0, 0)),        # qkv weight^T (permuted, scaled)
            pl.BlockSpec((C, C), lambda b: (0, 0)),            # proj weight^T
            pl.BlockSpec((1, C), lambda b: (0, 0)),            # proj bias
        ],
        out_specs=pl.BlockSpec((None, L, C), lambda b: (b, 0, 0)),
        compiler_params=pltpu.CompilerParams(
            dimension_semantics=("parallel",),
            vmem_limit_bytes=vmem_limit),
    )(x_cl, gamma2, beta2, gmat, wqkv_t, wproj_t, bproj2)


def attention_block(x, gamma, beta, w_qkv, w_proj, b_proj,
                    *, num_heads=1, num_groups=32, eps=1e-5,
                    compute_dtype=jnp.bfloat16, exp_dtype=None):
    """PyTorch-layout entry point: x is (B, C, L); returns (B, C, L)."""
    x_cl = jnp.transpose(x, (0, 2, 1))          # (B, L, C) channels-last for the kernel
    out_cl = attention_block_cl(x_cl, gamma, beta, w_qkv, w_proj, b_proj,
                                num_heads=num_heads, num_groups=num_groups,
                                eps=eps, compute_dtype=compute_dtype,
                                exp_dtype=exp_dtype)
    return jnp.transpose(out_cl, (0, 2, 1))


def attention_block_ref(x, gamma, beta, w_qkv, w_proj, b_proj,
                        *, num_heads=1, num_groups=32, eps=1e-5):
    """Pure-JAX f32 reference mirroring the PyTorch forward."""
    B, C, L = x.shape
    xg = x.reshape(B, num_groups, -1)
    mean = xg.mean(-1, keepdims=True)
    var = ((xg - mean) ** 2).mean(-1, keepdims=True)
    xn = ((xg - mean) / jnp.sqrt(var + eps)).reshape(B, C, L)
    xn = xn * gamma[None, :, None] + beta[None, :, None]

    qkv = jnp.einsum('oc,bcl->bol', w_qkv, xn)
    dh = C // num_heads
    qkv = qkv.reshape(B * num_heads, 3 * dh, L)
    q, k, v = qkv[:, :dh], qkv[:, dh:2 * dh], qkv[:, 2 * dh:]
    scale = 1.0 / math.sqrt(math.sqrt(dh))
    attn = jnp.einsum('bct,bcs->bts', q * scale, k * scale)
    attn = jax.nn.softmax(attn, axis=-1)
    h = jnp.einsum('bts,bcs->bct', attn, v).reshape(B, C, L)
    y = jnp.einsum('oc,bcl->bol', w_proj, h) + b_proj[None, :, None]
    return y + x


if __name__ == "__main__":
    # Shapes consistent with UNetGenerate defaults: model_channels=128,
    # num_heads=4, GroupNorm(32).  Small L for the demo.
    B, C, L = 2, 128, 16
    num_heads, num_groups = 4, 32

    key = jax.random.PRNGKey(0)
    kx, kg, kb, kq, kp, kpb = jax.random.split(key, 6)

    x = jax.random.normal(kx, (B, C, L), dtype=jnp.float32)
    gamma = 1.0 + 0.1 * jax.random.normal(kg, (C,), dtype=jnp.float32)
    beta = 0.1 * jax.random.normal(kb, (C,), dtype=jnp.float32)
    w_qkv = 0.1 * jax.random.normal(kq, (3 * C, C), dtype=jnp.float32)
    w_proj = 0.1 * jax.random.normal(kp, (C, C), dtype=jnp.float32)
    b_proj = 0.1 * jax.random.normal(kpb, (C,), dtype=jnp.float32)

    ref = attention_block_ref(x, gamma, beta, w_qkv, w_proj, b_proj,
                              num_heads=num_heads, num_groups=num_groups)

    # f32-compute path (only approx-reciprocal / accumulation-order error).
    out_f32 = jax.block_until_ready(attention_block(
        x, gamma, beta, w_qkv, w_proj, b_proj,
        num_heads=num_heads, num_groups=num_groups,
        compute_dtype=jnp.float32))
    assert out_f32.shape == (B, C, L)
    err32 = float(jnp.max(jnp.abs(out_f32 - ref)))
    assert jnp.allclose(out_f32, ref, atol=1e-2, rtol=1e-2), \
        f"f32-compute max err {err32}"

    # Performance path: bf16 MXU operands + bf16 exp, f32 accumulation.
    out_bf16 = jax.block_until_ready(attention_block(
        x, gamma, beta, w_qkv, w_proj, b_proj,
        num_heads=num_heads, num_groups=num_groups,
        compute_dtype=jnp.bfloat16))
    assert out_bf16.shape == (B, C, L)
    err16 = float(jnp.max(jnp.abs(out_bf16 - ref)))
    assert jnp.allclose(out_bf16, ref, atol=5e-2, rtol=5e-2), \
        f"bf16-compute max err {err16}"

    print("KERNEL_OK")
</pallas_src>

<mosaic_0001>
module attributes {stable_mosaic.version = 11 : i64} {
  func.func @attention_block_kernel(%arg0: i32, %arg1: memref<1x16x128xf32, #tpu.memory_space<vmem>>, %arg2: memref<1x128xf32, #tpu.memory_space<vmem>>, %arg3: memref<1x128xf32, #tpu.memory_space<vmem>>, %arg4: memref<128x128xf32, #tpu.memory_space<vmem>>, %arg5: memref<128x384xf32, #tpu.memory_space<vmem>>, %arg6: memref<128x128xf32, #tpu.memory_space<vmem>>, %arg7: memref<1x128xf32, #tpu.memory_space<vmem>>, %arg8: memref<1x16x128xf32, #tpu.memory_space<vmem>>) attributes {dimension_semantics = [#tpu.dimension_semantics<parallel>], iteration_bounds = array<i64: 2>, scalar_prefetch = 0 : i64, scratch_operands = 0 : i64, tpu.core_type = #tpu.core_type<tc>, window_params = [{transform_indices = @transform_0, window_bounds = array<i64: 1, 16, 128>}, {pipeline_mode = #tpu.pipeline_mode<synchronous>, transform_indices = @transform_1, window_bounds = array<i64: 1, 128>}, {pipeline_mode = #tpu.pipeline_mode<synchronous>, transform_indices = @transform_2, window_bounds = array<i64: 1, 128>}, {pipeline_mode = #tpu.pipeline_mode<synchronous>, transform_indices = @transform_3, window_bounds = array<i64: 128, 128>}, {pipeline_mode = #tpu.pipeline_mode<synchronous>, transform_indices = @transform_4, window_bounds = array<i64: 128, 384>}, {pipeline_mode = #tpu.pipeline_mode<synchronous>, transform_indices = @transform_5, window_bounds = array<i64: 128, 128>}, {pipeline_mode = #tpu.pipeline_mode<synchronous>, transform_indices = @transform_6, window_bounds = array<i64: 1, 128>}, {transform_indices = @transform_7, window_bounds = array<i64: 1, 16, 128>}]} {
    %c0 = arith.constant 0 : index
    %c0_0 = arith.constant 0 : index
    %c0_1 = arith.constant 0 : index
    %0 = vector.load %arg1[%c0, %c0_0, %c0_1] : memref<1x16x128xf32, #tpu.memory_space<vmem>>, vector<1x16x128xf32>
    %1 = vector.shape_cast %0 : vector<1x16x128xf32> to vector<16x128xf32>
    %c0_2 = arith.constant 0 : index
    %c0_3 = arith.constant 0 : index
    %2 = vector.load %arg4[%c0_2, %c0_3] : memref<128x128xf32, #tpu.memory_space<vmem>>, vector<128x128xf32>
    %cst = arith.constant dense<0.000000e+00> : vector<128xf32>
    %3 = vector.multi_reduction <add>, %1, %cst [0] : vector<16x128xf32> to vector<128xf32>
    %4 = vector.shape_cast %3 : vector<128xf32> to vector<1x128xf32>
    %cst_4 = arith.constant dense<0.000000e+00> : vector<1x128xf32>
    %5 = tpu.matmul %4, %2, %cst_4 {dimension_numbers = #tpu.dot_dimension_numbers<[1], [0], [0], [1], [0, 0, 1, 1], [], []>} : vector<1x128xf32>, vector<128x128xf32>, vector<1x128xf32> -> vector<1x128xf32>
    %cst_5 = arith.constant 1.562500e-02 : f32
    %6 = vector.broadcast %cst_5 : f32 to vector<1x128xf32>
    %7 = arith.mulf %5, %6 : vector<1x128xf32>
    %8 = vector.broadcast %7 : vector<1x128xf32> to vector<16x128xf32>
    %9 = arith.subf %1, %8 : vector<16x128xf32>
    %10 = arith.mulf %9, %9 : vector<16x128xf32>
    %cst_6 = arith.constant dense<0.000000e+00> : vector<128xf32>
    %11 = vector.multi_reduction <add>, %10, %cst_6 [0] : vector<16x128xf32> to vector<128xf32>
    %12 = vector.shape_cast %11 : vector<128xf32> to vector<1x128xf32>
    %cst_7 = arith.constant dense<0.000000e+00> : vector<1x128xf32>
    %13 = tpu.matmul %12, %2, %cst_7 {dimension_numbers = #tpu.dot_dimension_numbers<[1], [0], [0], [1], [0, 0, 1, 1], [], []>} : vector<1x128xf32>, vector<128x128xf32>, vector<1x128xf32> -> vector<1x128xf32>
    %cst_8 = arith.constant 1.562500e-02 : f32
    %14 = vector.broadcast %cst_8 : f32 to vector<1x128xf32>
    %15 = arith.mulf %13, %14 : vector<1x128xf32>
    %cst_9 = arith.constant 9.99999974E-6 : f32
    %16 = vector.broadcast %cst_9 : f32 to vector<1x128xf32>
    %17 = arith.addf %15, %16 : vector<1x128xf32>
    %18 = math.rsqrt %17 : vector<1x128xf32>
    %c0_10 = arith.constant 0 : index
    %c0_11 = arith.constant 0 : index
    %19 = vector.load %arg2[%c0_10, %c0_11] : memref<1x128xf32, #tpu.memory_space<vmem>>, vector<1x128xf32>
    %20 = arith.mulf %18, %19 : vector<1x128xf32>
    %21 = vector.broadcast %20 : vector<1x128xf32> to vector<16x128xf32>
    %22 = arith.mulf %9, %21 : vector<16x128xf32>
    %c0_12 = arith.constant 0 : index
    %c0_13 = arith.constant 0 : index
    %23 = vector.load %arg3[%c0_12, %c0_13] : memref<1x128xf32, #tpu.memory_space<vmem>>, vector<1x128xf32>
    %24 = vector.broadcast %23 : vector<1x128xf32> to vector<16x128xf32>
    %25 = arith.addf %22, %24 : vector<16x128xf32>
    %c0_14 = arith.constant 0 : index
    %c0_15 = arith.constant 0 : index
    %26 = vector.load %arg5[%c0_14, %c0_15] : memref<128x384xf32, #tpu.memory_space<vmem>>, vector<128x384xf32>
    %cst_16 = arith.constant dense<0.000000e+00> : vector<16x384xf32>
    %27 = tpu.matmul %25, %26, %cst_16 {dimension_numbers = #tpu.dot_dimension_numbers<[1], [0], [0], [1], [0, 0, 1, 1], [], []>} : vector<16x128xf32>, vector<128x384xf32>, vector<16x384xf32> -> vector<16x384xf32>
    %28 = vector.extract_strided_slice %27 {offsets = [0, 0], sizes = [16, 32], strides = [1, 1]} : vector<16x384xf32> to vector<16x32xf32>
    %29 = vector.extract_strided_slice %27 {offsets = [0, 128], sizes = [16, 32], strides = [1, 1]} : vector<16x384xf32> to vector<16x32xf32>
    %30 = vector.extract_strided_slice %27 {offsets = [0, 256], sizes = [16, 32], strides = [1, 1]} : vector<16x384xf32> to vector<16x32xf32>
    %cst_17 = arith.constant dense<0.000000e+00> : vector<16x16xf32>
    %31 = tpu.matmul %28, %29, %cst_17 {dimension_numbers = #tpu.dot_dimension_numbers<[1], [1], [0], [0], [0, 0, 1, 0], [], []>} : vector<16x32xf32>, vector<16x32xf32>, vector<16x16xf32> -> vector<16x16xf32>
    %cst_18 = arith.constant dense<0xFF800000> : vector<16xf32>
    %32 = vector.multi_reduction <maximumf>, %31, %cst_18 [1] : vector<16x16xf32> to vector<16xf32>
    %33 = vector.shape_cast %32 : vector<16xf32> to vector<16x1xf32>
    %34 = vector.broadcast %33 : vector<16x1xf32> to vector<16x16xf32>
    %35 = arith.subf %31, %34 : vector<16x16xf32>
    %36 = math.exp %35 : vector<16x16xf32>
    %cst_19 = arith.constant dense<0.000000e+00> : vector<16xf32>
    %37 = vector.multi_reduction <add>, %36, %cst_19 [1] : vector<16x16xf32> to vector<16xf32>
    %38 = vector.shape_cast %37 : vector<16xf32> to vector<16x1xf32>
    %cst_20 = arith.constant dense<0.000000e+00> : vector<16x32xf32>
    %39 = tpu.matmul %36, %30, %cst_20 {dimension_numbers = #tpu.dot_dimension_numbers<[1], [0], [0], [1], [0, 0, 1, 1], [], []>} : vector<16x16xf32>, vector<16x32xf32>, vector<16x32xf32> -> vector<16x32xf32>
    %40 = tpu.reciprocal %38 {approx = true} : vector<16x1xf32> -> vector<16x1xf32>
    %41 = vector.broadcast %40 : vector<16x1xf32> to vector<16x32xf32>
    %42 = arith.mulf %39, %41 : vector<16x32xf32>
    %43 = vector.extract_strided_slice %27 {offsets = [0, 32], sizes = [16, 32], strides = [1, 1]} : vector<16x384xf32> to vector<16x32xf32>
    %44 = vector.extract_strided_slice %27 {offsets = [0, 160], sizes = [16, 32], strides = [1, 1]} : vector<16x384xf32> to vector<16x32xf32>
    %45 = vector.extract_strided_slice %27 {offsets = [0, 288], sizes = [16, 32], strides = [1, 1]} : vector<16x384xf32> to vector<16x32xf32>
    %cst_21 = arith.constant dense<0.000000e+00> : vector<16x16xf32>
    %46 = tpu.matmul %43, %44, %cst_21 {dimension_numbers = #tpu.dot_dimension_numbers<[1], [1], [0], [0], [0, 0, 1, 0], [], []>} : vector<16x32xf32>, vector<16x32xf32>, vector<16x16xf32> -> vector<16x16xf32>
    %cst_22 = arith.constant dense<0xFF800000> : vector<16xf32>
    %47 = vector.multi_reduction <maximumf>, %46, %cst_22 [1] : vector<16x16xf32> to vector<16xf32>
    %48 = vector.shape_cast %47 : vector<16xf32> to vector<16x1xf32>
    %49 = vector.broadcast %48 : vector<16x1xf32> to vector<16x16xf32>
    %50 = arith.subf %46, %49 : vector<16x16xf32>
    %51 = math.exp %50 : vector<16x16xf32>
    %cst_23 = arith.constant dense<0.000000e+00> : vector<16xf32>
    %52 = vector.multi_reduction <add>, %51, %cst_23 [1] : vector<16x16xf32> to vector<16xf32>
    %53 = vector.shape_cast %52 : vector<16xf32> to vector<16x1xf32>
    %cst_24 = arith.constant dense<0.000000e+00> : vector<16x32xf32>
    %54 = tpu.matmul %51, %45, %cst_24 {dimension_numbers = #tpu.dot_dimension_numbers<[1], [0], [0], [1], [0, 0, 1, 1], [], []>} : vector<16x16xf32>, vector<16x32xf32>, vector<16x32xf32> -> vector<16x32xf32>
    %55 = tpu.reciprocal %53 {approx = true} : vector<16x1xf32> -> vector<16x1xf32>
    %56 = vector.broadcast %55 : vector<16x1xf32> to vector<16x32xf32>
    %57 = arith.mulf %54, %56 : vector<16x32xf32>
    %58 = vector.extract_strided_slice %27 {offsets = [0, 64], sizes = [16, 32], strides = [1, 1]} : vector<16x384xf32> to vector<16x32xf32>
    %59 = vector.extract_strided_slice %27 {offsets = [0, 192], sizes = [16, 32], strides = [1, 1]} : vector<16x384xf32> to vector<16x32xf32>
    %60 = vector.extract_strided_slice %27 {offsets = [0, 320], sizes = [16, 32], strides = [1, 1]} : vector<16x384xf32> to vector<16x32xf32>
    %cst_25 = arith.constant dense<0.000000e+00> : vector<16x16xf32>
    %61 = tpu.matmul %58, %59, %cst_25 {dimension_numbers = #tpu.dot_dimension_numbers<[1], [1], [0], [0], [0, 0, 1, 0], [], []>} : vector<16x32xf32>, vector<16x32xf32>, vector<16x16xf32> -> vector<16x16xf32>
    %cst_26 = arith.constant dense<0xFF800000> : vector<16xf32>
    %62 = vector.multi_reduction <maximumf>, %61, %cst_26 [1] : vector<16x16xf32> to vector<16xf32>
    %63 = vector.shape_cast %62 : vector<16xf32> to vector<16x1xf32>
    %64 = vector.broadcast %63 : vector<16x1xf32> to vector<16x16xf32>
    %65 = arith.subf %61, %64 : vector<16x16xf32>
    %66 = math.exp %65 : vector<16x16xf32>
    %cst_27 = arith.constant dense<0.000000e+00> : vector<16xf32>
    %67 = vector.multi_reduction <add>, %66, %cst_27 [1] : vector<16x16xf32> to vector<16xf32>
    %68 = vector.shape_cast %67 : vector<16xf32> to vector<16x1xf32>
    %cst_28 = arith.constant dense<0.000000e+00> : vector<16x32xf32>
    %69 = tpu.matmul %66, %60, %cst_28 {dimension_numbers = #tpu.dot_dimension_numbers<[1], [0], [0], [1], [0, 0, 1, 1], [], []>} : vector<16x16xf32>, vector<16x32xf32>, vector<16x32xf32> -> vector<16x32xf32>
    %70 = tpu.reciprocal %68 {approx = true} : vector<16x1xf32> -> vector<16x1xf32>
    %71 = vector.broadcast %70 : vector<16x1xf32> to vector<16x32xf32>
    %72 = arith.mulf %69, %71 : vector<16x32xf32>
    %73 = vector.extract_strided_slice %27 {offsets = [0, 96], sizes = [16, 32], strides = [1, 1]} : vector<16x384xf32> to vector<16x32xf32>
    %74 = vector.extract_strided_slice %27 {offsets = [0, 224], sizes = [16, 32], strides = [1, 1]} : vector<16x384xf32> to vector<16x32xf32>
    %75 = vector.extract_strided_slice %27 {offsets = [0, 352], sizes = [16, 32], strides = [1, 1]} : vector<16x384xf32> to vector<16x32xf32>
    %cst_29 = arith.constant dense<0.000000e+00> : vector<16x16xf32>
    %76 = tpu.matmul %73, %74, %cst_29 {dimension_numbers = #tpu.dot_dimension_numbers<[1], [1], [0], [0], [0, 0, 1, 0], [], []>} : vector<16x32xf32>, vector<16x32xf32>, vector<16x16xf32> -> vector<16x16xf32>
    %cst_30 = arith.constant dense<0xFF800000> : vector<16xf32>
    %77 = vector.multi_reduction <maximumf>, %76, %cst_30 [1] : vector<16x16xf32> to vector<16xf32>
    %78 = vector.shape_cast %77 : vector<16xf32> to vector<16x1xf32>
    %79 = vector.broadcast %78 : vector<16x1xf32> to vector<16x16xf32>
    %80 = arith.subf %76, %79 : vector<16x16xf32>
    %81 = math.exp %80 : vector<16x16xf32>
    %cst_31 = arith.constant dense<0.000000e+00> : vector<16xf32>
    %82 = vector.multi_reduction <add>, %81, %cst_31 [1] : vector<16x16xf32> to vector<16xf32>
    %83 = vector.shape_cast %82 : vector<16xf32> to vector<16x1xf32>
    %cst_32 = arith.constant dense<0.000000e+00> : vector<16x32xf32>
    %84 = tpu.matmul %81, %75, %cst_32 {dimension_numbers = #tpu.dot_dimension_numbers<[1], [0], [0], [1], [0, 0, 1, 1], [], []>} : vector<16x16xf32>, vector<16x32xf32>, vector<16x32xf32> -> vector<16x32xf32>
    %85 = tpu.reciprocal %83 {approx = true} : vector<16x1xf32> -> vector<16x1xf32>
    %86 = vector.broadcast %85 : vector<16x1xf32> to vector<16x32xf32>
    %87 = arith.mulf %84, %86 : vector<16x32xf32>
    %88 = tpu.concatenate %42, %57, %72, %87 in 1 : vector<16x32xf32>, vector<16x32xf32>, vector<16x32xf32>, vector<16x32xf32> -> vector<16x128xf32>
    %c0_33 = arith.constant 0 : index
    %c0_34 = arith.constant 0 : index
    %89 = vector.load %arg6[%c0_33, %c0_34] : memref<128x128xf32, #tpu.memory_space<vmem>>, vector<128x128xf32>
    %cst_35 = arith.constant dense<0.000000e+00> : vector<16x128xf32>
    %90 = tpu.matmul %88, %89, %cst_35 {dimension_numbers = #tpu.dot_dimension_numbers<[1], [0], [0], [1], [0, 0, 1, 1], [], []>} : vector<16x128xf32>, vector<128x128xf32>, vector<16x128xf32> -> vector<16x128xf32>
    %c0_36 = arith.constant 0 : index
    %c0_37 = arith.constant 0 : index
    %91 = vector.load %arg7[%c0_36, %c0_37] : memref<1x128xf32, #tpu.memory_space<vmem>>, vector<1x128xf32>
    %92 = vector.broadcast %91 : vector<1x128xf32> to vector<16x128xf32>
    %93 = arith.addf %1, %92 : vector<16x128xf32>
    %94 = arith.addf %93, %90 : vector<16x128xf32>
    %c0_38 = arith.constant 0 : index
    %c0_39 = arith.constant 0 : index
    %c0_40 = arith.constant 0 : index
    %95 = vector.load %arg8[%c0_38, %c0_39, %c0_40] : memref<1x16x128xf32, #tpu.memory_space<vmem>>, vector<1x16x128xf32>
    %96 = vector.shape_cast %95 : vector<1x16x128xf32> to vector<16x128xf32>
    %97 = vector.shape_cast %94 : vector<16x128xf32> to vector<1x16x128xf32>
    tpu.vector_store %arg8[%c0_38, %c0_39, %c0_40], %97 {strides = array<i32>} : memref<1x16x128xf32, #tpu.memory_space<vmem>>, vector<1x16x128xf32>,
    return
  }
  func.func @transform_0(%arg0: i32) -> (i32, i32, i32) {
    %c0_i32 = arith.constant 0 : i32
    %c0_i32_0 = arith.constant 0 : i32
    %c0_i32_1 = arith.constant 0 : i32
    return %arg0, %c0_i32, %c0_i32_0 : i32, i32, i32
  }
  func.func @transform_1(%arg0: i32) -> (i32, i32) {
    %c0_i32 = arith.constant 0 : i32
    %c0_i32_0 = arith.constant 0 : i32
    %c0_i32_1 = arith.constant 0 : i32
    return %c0_i32, %c0_i32_0 : i32, i32
  }
  func.func @transform_2(%arg0: i32) -> (i32, i32) {
    %c0_i32 = arith.constant 0 : i32
    %c0_i32_0 = arith.constant 0 : i32
    %c0_i32_1 = arith.constant 0 : i32
    return %c0_i32, %c0_i32_0 : i32, i32
  }
  func.func @transform_3(%arg0: i32) -> (i32, i32) {
    %c0_i32 = arith.constant 0 : i32
    %c0_i32_0 = arith.constant 0 : i32
    %c0_i32_1 = arith.constant 0 : i32
    return %c0_i32, %c0_i32_0 : i32, i32
  }
  func.func @transform_4(%arg0: i32) -> (i32, i32) {
    %c0_i32 = arith.constant 0 : i32
    %c0_i32_0 = arith.constant 0 : i32
    %c0_i32_1 = arith.constant 0 : i32
    return %c0_i32, %c0_i32_0 : i32, i32
  }
  func.func @transform_5(%arg0: i32) -> (i32, i32) {
    %c0_i32 = arith.constant 0 : i32
    %c0_i32_0 = arith.constant 0 : i32
    %c0_i32_1 = arith.constant 0 : i32
    return %c0_i32, %c0_i32_0 : i32, i32
  }
  func.func @transform_6(%arg0: i32) -> (i32, i32) {
    %c0_i32 = arith.constant 0 : i32
    %c0_i32_0 = arith.constant 0 : i32
    %c0_i32_1 = arith.constant 0 : i32
    return %c0_i32, %c0_i32_0 : i32, i32
  }
  func.func @transform_7(%arg0: i32) -> (i32, i32, i32) {
    %c0_i32 = arith.constant 0 : i32
    %c0_i32_0 = arith.constant 0 : i32
    %c0_i32_1 = arith.constant 0 : i32
    return %arg0, %c0_i32, %c0_i32_0 : i32, i32, i32
  }
}

</mosaic_0001>

<bundles_post_ra>
// kernel: tpu_custom_call.1
= control target key start
LH: loop header
LB: loop body
LE: loop exit
PB: predicated region body
PF: predicated region fallthrough
CT: control target
= control target key end

     0   :  { %s3171_s0 = inlined_call_operand.hbm [shape: f32[2,16,128], index: 0, kind: input, shape index: {}]   ;;  %s3172_s1 = inlined_call_operand.vmem [shape: f32[1,128], index: 1, kind: input, shape index: {}]   ;;  %s3173_s2 = inlined_call_operand.vmem [shape: f32[1,128], index: 2, kind: input, shape index: {}]   ;;  %s3174_s3 = inlined_call_operand.hbm [shape: f32[128,128], index: 3, kind: input, shape index: {}]   ;;  %s3175_s4 = inlined_call_operand.hbm [shape: f32[128,384], index: 4, kind: input, shape index: {}]   ;;  %s3176_s5 = inlined_call_operand.hbm [shape: f32[128,128], index: 5, kind: input, shape index: {}]   ;;  %s3177_s6 = inlined_call_operand.vmem [shape: f32[1,128], index: 6, kind: input, shape index: {}]   ;;  %s3178_s7 = inlined_call_operand.hbm [shape: f32[2,16,128], index: 7, kind: output, shape index: {}]  }
   0x1   :  { %3187 = sst [smem:[#allocation16_spill]] %s3174_s3 }
   0x2   :  { %12 = vsyncpa [#allocation3], 0 }
   0x3   :  { %14 = vsyncpa [#allocation3 + $0x1], 0 }
   0x4   :  { %15 = vsyncpa [#allocation6], 0 }
   0x5   :  { %16 = vsyncpa [#allocation9], 0 }
   0x6   :  { %17 = vsyncpa [#allocation4], 0 }
   0x7   :  { %19 = vsyncpa [#allocation4 + $0x1], 0  ;;  %s2733_s24 = smov 0   ;;  %s2735_s25 = smov 0  }
   0x8   :  { %s2737_s26 = smov 0   ;;  %s2739_s27 = smov 0  }
   0x9 LB: > { %s2754_s28 = sadd.s32 4294967295, %s2674_s27   ;;  %s1788_s29 = sadd.s32 4294967294, %s2674_s27   ;;  %s2674_s27 = sphi %s2739_s27, %s3214_s27   ;;  %s2670_s26 = sphi %s2737_s26, %s3213_s26   ;;  %s2666_s25 = sphi %s2735_s25, %s3212_s25   ;;  %s2662_s24 = sphi %s2733_s24, %s3211_s24  }
   0xa   : > { %p45_p0 = scmp.ne.s32.totalorder %s2666_s25, %s2662_s24  ;;  %p3179_p1 = scmp.eq.s32.totalorder %s2754_s28, 0 }
   0xb   : > { %p201_p3 = scmp.eq.s32.totalorder %s1788_s29, 1  ;;  %p1789_p5 = scmp.ge.s32.totalorder %s2674_s27, 1 }
   0xc   : > { %p2763_p4 = por %p3179_p1, %p45_p0  ;;  %p208_p7 = scmp.lt.s32.totalorder %s2674_s27, 3 }
   0xd   : > { %p2768_p6 = por %p201_p3, %p45_p0  ;;  %s2676_s10 = smov [#allocation5]  }
   0xe   : > { %s3188_s30 = scalar_select %p2763_p4, 1, 0 }
   0xf   : > { %s3189_s8 = scalar_select %p2768_p6, 1, 0 }
  0x10   : > { %p2773_p8 = pnand %p1789_p5, %p208_p7  ;;  %s226_s11 = sshll.u32 %s2676_s10, 4  ;;  %s2777_s11 = int_to_ptr.vmem [resolvable:$true] %s226_s11 }
  0x11   : > { %3190 = sst [smem:[#allocation15_spill]] %s3189_s8  ;;  %s2677_s13 = smov [#allocation7]  }
  0x12   : > { %s3191_s9 = scalar_select %p2773_p8, 1, 0 }
  0x13   : > { %p2334_p9 = pneg %p2773_p8  ;;  %s239_s14 = sshll.u32 %s2677_s13, 4  ;;  %s2788_s14 = int_to_ptr.vmem [resolvable:$true] %s239_s14 }
  0x14   : > { %s3193_s3 = sld [smem:[#allocation16_spill]] }
  0x15   : > { %p2784_p11 = pnand %p2334_p9, %p3179_p1 }
  0x17   : > { %p2798_p13 = pneg %p2784_p11 }
  0x1a   : > { %s2486_s17 = scalar_lea.hbm %s3193_s3, 2048 }
  0x1b   : > { %p2487_p12 = scmp.ne.s32.totalorder %s3193_s3, %s2486_s17  ;;  %p2493_p5 = scmp.lt.u32.totalorder %s2486_s17, %s3193_s3 }
  0x1d   : > { %p2489_p0 = pnand %p2798_p13, %p2487_p12 }
  0x1f   : > { %p2490_p3 = pneg %p2489_p0 }
  0x21   : > { %p2495_p7 = pnand %p2493_p5, %p2490_p3 }
  0x23   : > { %2498 = shalt.err (!%p2495_p7)
}
  0x24   : > { %s2499_s23 = scalar_lea.vmem %s2777_s11, 2048  ;;  %p2507_p2 = scmp.lt.s32.totalorder %s2777_s11, %s2777_s11 }
  0x25   : > { %p2500_p9 = scmp.ne.s32.totalorder %s2777_s11, %s2499_s23  ;;  %p2508_p6 = scmp.lt.s32.totalorder %s2499_s23, %s2499_s23 }
  0x27   : > { %p2502_p10 = pnand %p2500_p9, %p2798_p13  ;;  %p2509_p12 = por %p2508_p6, %p2507_p2 }
  0x29   : > { %p2503_p1 = pneg %p2502_p10 }
  0x2b   : > { %p2510_p0 = pnand %p2509_p12, %p2503_p1 }
  0x2d   : > { %2513 = shalt.err (!%p2510_p0)
}
  0x2e   : > { %s3180_s29 = smov 128   ;;  %s3182_s10 = smov 8  }
  0x2f   : > { %2337 = dma.hbm_to_vmem [thread:$0]  (!%p2784_p11), %s3193_s3, 2048, %s2777_s11, [#allocation6], %s3180_s29, %s3180_s29, %s3182_s10  }
  0x30   : > { %s2514_s18 = scalar_lea.hbm %s3175_s4, 6144 }
  0x31   : > { %p2515_p1 = scmp.ne.s32.totalorder %s3175_s4, %s2514_s18  ;;  %p2521_p10 = scmp.lt.u32.totalorder %s2514_s18, %s3175_s4 }
  0x33   : > { %p2517_p2 = pnand %p2515_p1, %p2798_p13 }
  0x35   : > { %p2518_p6 = pneg %p2517_p2 }
  0x37   : > { %p2523_p3 = pnand %p2521_p10, %p2518_p6 }
  0x39   : > { %2526 = shalt.err (!%p2523_p3)
}
  0x3a   : > { %s2527_s11 = scalar_lea.vmem %s2788_s14, 6144  ;;  %p2535_p12 = scmp.lt.s32.totalorder %s2788_s14, %s2788_s14 }
  0x3b   : > { %p2528_p5 = scmp.ne.s32.totalorder %s2788_s14, %s2527_s11  ;;  %p2536_p0 = scmp.lt.s32.totalorder %s2527_s11, %s2527_s11 }
  0x3d   : > { %p2530_p7 = pnand %p2528_p5, %p2798_p13  ;;  %p2537_p1 = por %p2536_p0, %p2535_p12 }
  0x3f   : > { %p2531_p9 = pneg %p2530_p7 }
  0x41   : > { %p2538_p2 = pnand %p2537_p1, %p2531_p9 }
  0x43   : > { %2541 = shalt.err (!%p2538_p2)
}
  0x44   : > { %s2680_s13 = smov 384   ;;  %s2681_s15 = smov 24  }
  0x45   : > { %2340 = dma.hbm_to_vmem [thread:$0]  (!%p2784_p11), %s3175_s4, 6144, %s2788_s14, [#allocation6], %s2680_s13, %s2680_s13, %s2681_s15  }
  0x46   : > { %s2682_s18 = smov [#allocation8]   ;;  %s2846_s21 = sadd.s32 1, %s2674_s27  }
  0x47   : > { %s252_s19 = sshll.u32 %s2682_s18, 4  ;;  %s2542_s11 = scalar_lea.hbm %s3176_s5, 2048  ;;  %s253_s19 = int_to_ptr.vmem [resolvable:$true] %s252_s19 }
  0x48   : > { %p2543_p6 = scmp.ne.s32.totalorder %s3176_s5, %s2542_s11  ;;  %p2549_p5 = scmp.lt.u32.totalorder %s2542_s11, %s3176_s5 }
  0x4a   : > { %p2545_p10 = pnand %p2543_p6, %p2798_p13 }
  0x4c   : > { %p2546_p3 = pneg %p2545_p10 }
  0x4e   : > { %p2551_p7 = pnand %p2549_p5, %p2546_p3 }
  0x50   : > { %2554 = shalt.err (!%p2551_p7)
}
  0x51   : > { %s2555_s14 = scalar_lea.vmem %s253_s19, 2048  ;;  %p2563_p1 = scmp.lt.s32.totalorder %s253_s19, %s253_s19 }
  0x52   : > { %p2556_p9 = scmp.ne.s32.totalorder %s253_s19, %s2555_s14  ;;  %p2564_p2 = scmp.lt.s32.totalorder %s2555_s14, %s2555_s14 }
  0x54   : > { %p2558_p12 = pnand %p2556_p9, %p2798_p13  ;;  %p2565_p4 = por %p2564_p2, %p2563_p1 }
  0x56   : > { %p2559_p0 = pneg %p2558_p12 }
  0x58   : > { %p2566_p8 = pnand %p2565_p4, %p2559_p0 }
  0x5a   : > { %2569 = shalt.err (!%p2566_p8)
}
  0x5b   : > { %s3195_s29 = smov 8   ;;  %s3196_s10 = smov 128  }
  0x5c   : > { %2343 = dma.hbm_to_vmem [thread:$0]  (!%p2784_p11), %s3176_s5, 2048, %s253_s19, [#allocation9], %s3196_s10, %s3196_s10, %s3195_s29  }
  0x5d   : > { %s29_s20 = ssub.s32 %s2674_s27, %s2846_s21  ;;  %s32_s12 = sadd.s32 1, %s2670_s26 }
  0x5e   : > { %p30_p4 = scmp.eq.s32.totalorder %s29_s20, 0  ;;  %p39_p8 = scmp.ne.s32.totalorder %s2670_s26, %s2666_s25 }
  0x5f   : > { %p40_p13 = scmp.eq.s32.totalorder %s2674_s27, 0  ;;  %p2355_p6 = scmp.lt.s32.totalorder %s2674_s27, 2 }
  0x60   : > { %s2877_s13 = scalar_select %p30_p4, %s2670_s26, %s32_s12  }
  0x61   : > { %p41_p10 = por %p40_p13, %p39_p8  ;;  %p3197_p3 = scmp.eq.s32.totalorder %s2754_s28, 1 }
  0x62   : > { %s269_s16 = sand.u32 1, %s2670_s26   ;;  %s1834_s17 = sshll.u32 %s2674_s27, 8 }
  0x63   : > { %p2881_p5 = por %p3197_p3, %p39_p8  ;;  %s1794_s18 = sshll.u32 %s269_s16, 4 }
  0x64   : > { %s2890_s19 = scalar_lea.hbm %s3171_s0, %s1834_s17  ;;  %s273_s11 = scalar_lea.vmem [#allocation2], %s1794_s18 }
  0x65   : > { %s280_s14 = sshll.u32 %s273_s11, 4  ;;  %p2892_p11 = pnand %p2355_p6, %p41_p10  ;;  %s2896_s14 = int_to_ptr.vmem [resolvable:$true] %s280_s14 }
  0x66   : > { %s2898_s8 = scalar_lea.sflag [#allocation3], %s269_s16  ;;  %s2570_s20 = scalar_lea.hbm %s2890_s19, 256 }
  0x67   : > { %p2571_p7 = scmp.ne.s32.totalorder %s2890_s19, %s2570_s20  ;;  %p2572_p9 = pneg %p2892_p11 }
  0x68   : > { %s2575_s18 = scalar_lea.hbm %s3171_s0, 512  ;;  %p2576_p1 = scmp.lt.u32.totalorder %s2890_s19, %s3171_s0 }
  0x69   : > { %p2573_p12 = pnand %p2572_p9, %p2571_p7  ;;  %p2577_p2 = scmp.lt.u32.totalorder %s2575_s18, %s2570_s20 }
  0x6a   : > { %p2579_p8 = scmp.lt.u32.totalorder %s2570_s20, %s2890_s19 }
  0x6b   : > { %p2574_p0 = pneg %p2573_p12  ;;  %p2578_p4 = por %p2577_p2, %p2576_p1 }
  0x6d   : > { %p2580_p13 = por %p2579_p8, %p2578_p4 }
  0x6f   : > { %p2581_p6 = pnand %p2580_p13, %p2574_p0 }
  0x71   : > { %2584 = shalt.err (!%p2581_p6)
}
  0x72   : > { %s2585_s16 = scalar_lea.vmem %s2896_s14, 256  ;;  %s2683_s11 = smov [#allocation2]  }
  0x73   : > { %p2586_p10 = scmp.ne.s32.totalorder %s2896_s14, %s2585_s16  ;;  %s2590_s12 = sshll.u32 %s2683_s11, 4  ;;  %s2591_s12 = int_to_ptr.vmem [resolvable:$false] %s2590_s12 }
  0x74   : > { %s2592_s17 = scalar_lea.vmem %s2591_s12, 512  ;;  %p2593_p12 = scmp.lt.s32.totalorder %s2896_s14, %s2591_s12 }
  0x75   : > { %p2588_p3 = pnand %p2586_p10, %p2572_p9  ;;  %p2594_p1 = scmp.lt.s32.totalorder %s2592_s17, %s2585_s16 }
  0x77   : > { %p2589_p7 = pneg %p2588_p3  ;;  %p2595_p2 = por %p2594_p1, %p2593_p12 }
  0x79   : > { %p2596_p4 = pnand %p2595_p2, %p2589_p7 }
  0x7b   : > { %2599 = shalt.err (!%p2596_p4)
}
  0x7c   : > { %2347 = dma.hbm_to_vmem [thread:$0]  (!%p2892_p11), %s2890_s19, 256, %s2896_s14, %s2898_s8, %s3196_s10, %s3196_s10, %s3195_s29  }
  0x7d   : > { %p3200_p9 = scmp.ne.s32.totalorder %s3191_s9, 0 }
  0x7e   : > { %s2932_s20 = sand.u32 (!%p3200_p9), 1, %s2666_s25   ;;  %p3201_p0 = scmp.ne.s32.totalorder (!%p3200_p9), %s3188_s30, 0 }
  0x7f   : > { %292 = sbr.rel (%p3200_p9) target bundleno = 2582 (0xa16), region = 48  ;;  %s1798_s18 = sshll.u32 (!%p3200_p9), %s2932_s20, 4 }
  0x80   : > { %s295_s22 = scalar_lea.sflag (!%p3200_p9), [#allocation3], %s2932_s20  ;;  %s298_s3 = scalar_lea.vmem (!%p3200_p9), [#allocation2], %s1798_s18 }
  0x86   : > { %2645 = dma.done.wait (%p3201_p0), %s295_s22, 256  }
  0x87   : > { %2647 = vsyncadd (%p3201_p0), %s295_s22, 4294967040  ;;  %p3202_p11 = scmp.eq.s32.totalorder %s2754_s28, 0 }
  0x89   : > { %2649 = dma.done.wait (%p3202_p11), [#allocation6], 8192   ;;  %p3203_p8 = pmov %p3202_p11 }
  0x8b   : > { %2651 = vsyncadd (%p3203_p8), [#allocation6], 4294959104  ;;  %p3204_p13 = pmov %p3203_p8 }
  0x8c   : > { %p3205_p6 = pmov %p3203_p8 }
  0x8d   : > { %2653 = dma.done.wait (%p3204_p13), [#allocation9], 2048  }
  0x8e   : > { %2655 = vsyncadd (%p3205_p6), [#allocation9], 4294965248  ;;  %v2684_v0 = vmov 0.0|0.0   ;;  %vm2685_vm0 = vmmov 0   ;;  %v2686_v1 = vmov 0.0   ;;  %v343_v2 = vld [vmem:[#allocation5] sm:$0xff]  ;;  %v437_v50 = vlaneseq }
  0x8f   : > { %2134 = vmatprep.subr.bf16.mxu0 %v2684_v0  ;;  %1970 = vmatprep.mubr.msk.f32.mxu0 %vm2685_vm0, %v2686_v1  ;;  %v344_v3 = vld [vmem:[#allocation5 + $0x8] sm:$0xff]  ;;  %v345_v4 = vld [vmem:[#allocation5 + $0x10] sm:$0xff]  ;;  %v346_v6 = vld [vmem:[#allocation5 + $0x18] sm:$0xff]  ;;  %vm742_vm1 = vcmask 261120   ;;  %s2687_s19 = smov 96   ;;  %s2688_s14 = smov 64  }
  0x90   : > { %2158 = vmatprep.subr.bf16.mxu1 %v2684_v0  ;;  %2005 = vmatprep.mubr.msk.f32.mxu1 %vm2685_vm0, %v2686_v1  ;;  %v2135_v5 = vpack.c.bf16 %v344_v3, %v343_v2  ;;  %v2138_v7 = vpack.c.bf16 %v346_v6, %v345_v4  ;;  %v347_v8 = vld [vmem:[#allocation5 + $0x20] sm:$0xff]  ;;  %v348_v9 = vld [vmem:[#allocation5 + $0x28] sm:$0xff]  ;;  %v349_v14 = vld [vmem:[#allocation5 + $0x30] sm:$0xff]  ;;  %v2975_v51 = vshrl.u32 %v437_v50, 7  ;;  %vm830_vm3 = vcmask 130048   ;;  %s2689_s8 = smov 32  }
  0x91   : > { %v2956_v10 = vld [vmem:[%s298_s3] sm:$0xff]  ;;  %v2958_v11 = vld [vmem:[%s298_s3 + $0x8] sm:$0xff]  ;;  %v2141_v13 = vpack.c.bf16 %v348_v9, %v347_v8  ;;  %vm3011_vm2 = vmpackc.low %vm742_vm1, %vm742_vm1  ;;  %vm1562_vm4 = vcmask 523264   ;;  %vm1565_vm5 = vcmask 785408   ;;  %s340_s11 = scalar_lea.vmem [#allocation10], %s1798_s18  ;;  %s1835_s17 = sshll.u32 %s2754_s28, 8 }
  0x92   : > { %2136 = vmatpush3.bf16.msra.mxu0 %v2135_v5  ;;  %2160 = vmatpush3.bf16.msra.mxu1 %v2135_v5  ;;  %v359_v12 = vadd.f32 %v2958_v11, %v2956_v10  ;;  %v350_v15 = vld [vmem:[#allocation5 + $0x38] sm:$0xff]  ;;  %v351_v18 = vld [vmem:[#allocation5 + $0x40] sm:$0xff]  ;;  %v352_v19 = vld [vmem:[#allocation5 + $0x48] sm:$0xff]  ;;  %v439_v52 = vsub.s32 0, %v2975_v51  ;;  %s1686_s12 = sshll.u32 %s340_s11, 4  ;;  %s3127_s30 = scalar_lea.hbm %s3178_s7, %s1835_s17  ;;  %s3122_s12 = int_to_ptr.vmem [resolvable:$true] %s1686_s12 }
  0x93   : > { %2137 = vmatprep.subr.bf16.mxu0 %v2684_v0  ;;  %2161 = vmatprep.subr.bf16.mxu1 %v2684_v0  ;;  %v2144_v17 = vpack.c.bf16 %v350_v15, %v349_v14  ;;  %v2147_v21 = vpack.c.bf16 %v352_v19, %v351_v18  ;;  %v353_v22 = vld [vmem:[#allocation5 + $0x50] sm:$0xff]  ;;  %v354_v23 = vld [vmem:[#allocation5 + $0x58] sm:$0xff]  ;;  %v355_v26 = vld [vmem:[#allocation5 + $0x60] sm:$0xff]  ;;  %s1673_s18 = scalar_lea.sflag [#allocation4], %s2932_s20  ;;  %s2600_s9 = scalar_lea.vmem %s3122_s12, 256 }
  0x94   : > { %v360_v16 = vrot.slane %v359_v12, 4  ;;  %v2150_v25 = vpack.c.bf16 %v354_v23, %v353_v22  ;;  %v356_v27 = vld [vmem:[#allocation5 + $0x68] sm:$0xff]  ;;  %v357_v30 = vld [vmem:[#allocation5 + $0x70] sm:$0xff]  ;;  %v358_v31 = vld [vmem:[#allocation5 + $0x78] sm:$0xff]  ;;  %p2601_p10 = scmp.ne.s32.totalorder %s3122_s12, %s2600_s9  ;;  %s2690_s28 = smov [#allocation10]  }
  0x95   : > { %v2153_v29 = vpack.c.bf16 %v356_v27, %v355_v26  ;;  %v2156_v33 = vpack.c.bf16 %v358_v31, %v357_v30  ;;  %v543_v35 = vld [vmem:[#allocation7 + $0x8] sm:$0xff]  ;;  %v546_v36 = vld [vmem:[#allocation7 + $0x20] sm:$0xff]  ;;  %v545_v39 = vld [vmem:[#allocation7 + $0x18] sm:$0xff]  ;;  %s2604_s29 = sshll.u32 %s2690_s28, 4  ;;  %s2605_s29 = int_to_ptr.vmem [resolvable:$false] %s2604_s29 }
  0x96   : > { %2139 = vmatpush3.bf16.msra.mxu0 %v2138_v7  ;;  %2163 = vmatpush3.bf16.msra.mxu1 %v2138_v7  ;;  %v361_v20 = vadd.f32 %v360_v16, %v359_v12  ;;  %v542_v37 = vld [vmem:[#allocation7] sm:$0xff]  ;;  %v2182_v38 = vpack.c.bf16 %v546_v36, %v543_v35  ;;  %v544_v40 = vld [vmem:[#allocation7 + $0x10] sm:$0xff]  ;;  %v547_v41 = vld [vmem:[#allocation7 + $0x28] sm:$0xff]  ;;  %p2602_p3 = pnand %p2601_p10, %p2881_p5  ;;  %s2606_s10 = scalar_lea.vmem %s2605_s29, 512 }
  0x97   : > { %2140 = vmatprep.subr.bf16.mxu0 %v2684_v0  ;;  %2164 = vmatprep.subr.bf16.mxu1 %v2684_v0  ;;  %v2184_v42 = vpack.c.bf16 %v545_v39, %v542_v37  ;;  %v2214_v43 = vpack.c.bf16 %v547_v41, %v544_v40  ;;  %v549_v44 = vld [vmem:[#allocation7 + $0x38] sm:$0xff]  ;;  %v552_v45 = vld [vmem:[#allocation7 + $0x50] sm:$0xff]  ;;  %v551_v48 = vld [vmem:[#allocation7 + $0x48] sm:$0xff]  ;;  %p2607_p12 = scmp.lt.s32.totalorder %s3122_s12, %s2605_s29  ;;  %p2608_p1 = scmp.lt.s32.totalorder %s2606_s10, %s2600_s9 }
  0x98   : > { %v362_v24 = vrot.slane %v361_v20, 2  ;;  %v548_v46 = vld [vmem:[#allocation7 + $0x30] sm:$0xff]  ;;  %v2186_v47 = vpack.c.bf16 %v552_v45, %v549_v44  ;;  %v550_v3 = vld [vmem:[#allocation7 + $0x40] sm:$0xff]  ;;  %v553_v4 = vld [vmem:[#allocation7 + $0x58] sm:$0xff]  ;;  %p2603_p7 = pneg %p2602_p3 }
  0x99   : > { %v2188_v49 = vpack.c.bf16 %v551_v48, %v548_v46  ;;  %v2218_v7 = vpack.c.bf16 %v553_v4, %v550_v3  ;;  %v555_v8 = vld [vmem:[#allocation7 + $0x68] sm:$0xff]  ;;  %v558_v9 = vld [vmem:[#allocation7 + $0x80] sm:$0xff]  ;;  %v557_v14 = vld [vmem:[#allocation7 + $0x78] sm:$0xff]  ;;  %p2609_p2 = por %p2608_p1, %p2607_p12 }
  0x9a   : > { %2142 = vmatpush3.bf16.msra.mxu0 %v2141_v13  ;;  %2166 = vmatpush3.bf16.msra.mxu1 %v2141_v13  ;;  %v363_v28 = vadd.f32 %v362_v24, %v361_v20  ;;  %v2190_v12 = vpack.c.bf16 %v558_v9, %v555_v8  ;;  %v554_v13 = vld [vmem:[#allocation7 + $0x60] sm:$0xff]  ;;  %v556_v15 = vld [vmem:[#allocation7 + $0x70] sm:$0xff]  ;;  %v561_v19 = vld [vmem:[#allocation7 + $0x98] sm:$0xff] }
  0x9b   : > { %2143 = vmatprep.subr.bf16.mxu0 %v2684_v0  ;;  %2167 = vmatprep.subr.bf16.mxu1 %v2684_v0  ;;  %v2192_v16 = vpack.c.bf16 %v557_v14, %v554_v13  ;;  %v564_v20 = vld [vmem:[#allocation7 + $0xb0] sm:$0xff]  ;;  %v563_v23 = vld [vmem:[#allocation7 + $0xa8] sm:$0xff]  ;;  %v562_v24 = vld [vmem:[#allocation7 + $0xa0] sm:$0xff]  ;;  %p2610_p4 = pnand %p2609_p2, %p2603_p7 }
  0x9c   : > { %v364_v32 = vrot.slane %v363_v28, 1  ;;  %v560_v22 = vld [vmem:[#allocation7 + $0x90] sm:$0xff]  ;;  %v565_v26 = vld [vmem:[#allocation7 + $0xb8] sm:$0xff]  ;;  %v566_v31 = vld [vmem:[#allocation7 + $0xc0] sm:$0xff] }
  0x9d   : > { %v2226_v27 = vpack.c.bf16 %v565_v26, %v562_v24  ;;  %v571_v35 = vld [vmem:[#allocation7 + $0xe8] sm:$0xff]  ;;  %v573_v37 = vld [vmem:[#allocation7 + $0xf8] sm:$0xff]  ;;  %v572_v40 = vld [vmem:[#allocation7 + $0xf0] sm:$0xff] }
  0x9e   : > { %2145 = vmatpush3.bf16.msra.mxu0 %v2144_v17  ;;  %2169 = vmatpush3.bf16.msra.mxu1 %v2144_v17  ;;  %v365_v34 = vadd.f32 %v364_v32, %v363_v28  ;;  %v559_v17 = vld [vmem:[#allocation7 + $0x88] sm:$0xff]  ;;  %v569_v32 = vld [vmem:[#allocation7 + $0xd8] sm:$0xff]  ;;  %v525_v9 = vld [vmem:[%s3172_s1] sm:$0x1] }
  0x9f   : > { %2146 = vmatprep.subr.bf16.mxu0 %v2684_v0  ;;  %2170 = vmatprep.subr.bf16.mxu1 %v2684_v0  ;;  %v2222_v18 = vpack.c.bf16 %v559_v17, %v556_v15  ;;  %v567_v28 = vld [vmem:[#allocation7 + $0xc8] sm:$0xff]  ;;  %v577_v44 = vld [vmem:[#allocation7 + $0x118] sm:$0xff]  ;;  %v1803_v15 = vld [vmem:[%s3173_s2] ss:$0 sm:$0xff] }
  0xa0   : > { %v575_v41 = vld [vmem:[#allocation7 + $0x108] sm:$0xff]  ;;  %v581_v50 = vld [vmem:[#allocation7 + $0x138] sm:$0xff] }
  0xa1   : > { %v579_v46 = vld [vmem:[#allocation7 + $0x128] sm:$0xff] }
  0xa2   : > { %2148 = vmatpush3.bf16.msra.mxu0 %v2147_v21  ;;  %2172 = vmatpush3.bf16.msra.mxu1 %v2147_v21  ;;  %v2194_v21 = vpack.c.bf16 %v564_v20, %v561_v19 }
  0xa3   : > { %2149 = vmatprep.subr.bf16.mxu0 %v2684_v0  ;;  %2173 = vmatprep.subr.bf16.mxu1 %v2684_v0 }
  0xa6   : > { %2151 = vmatpush3.bf16.msra.mxu0 %v2150_v25  ;;  %2175 = vmatpush3.bf16.msra.mxu1 %v2150_v25  ;;  %v2196_v25 = vpack.c.bf16 %v563_v23, %v560_v22 }
  0xa7   : > { %2152 = vmatprep.subr.bf16.mxu0 %v2684_v0  ;;  %2176 = vmatprep.subr.bf16.mxu1 %v2684_v0 }
  0xaa   : > { %2154 = vmatpush3.bf16.msra.mxu0 %v2153_v29  ;;  %2178 = vmatpush3.bf16.msra.mxu1 %v2153_v29  ;;  %v570_v29 = vld [vmem:[#allocation7 + $0xe0] sm:$0xff] }
  0xab   : > { %2155 = vmatprep.subr.bf16.mxu0 %v2684_v0  ;;  %2179 = vmatprep.subr.bf16.mxu1 %v2684_v0  ;;  %v2198_v30 = vpack.c.bf16 %v570_v29, %v567_v28 }
  0xae   : > { %2157 = vmatpush3.bf16.msra.mxu0 %v2156_v33  ;;  %2181 = vmatpush3.bf16.msra.mxu1 %v2156_v33  ;;  %v568_v33 = vld [vmem:[#allocation7 + $0xd0] sm:$0xff] }
  0xaf   : > { %2183 = vmatprep.subr.bf16.mxu0 %v2182_v38  ;;  %2215 = vmatprep.subr.bf16.mxu1 %v2214_v43  ;;  %v2230_v36 = vpack.c.bf16 %v571_v35, %v568_v33  ;;  %v576_v38 = vld [vmem:[#allocation7 + $0x110] sm:$0xff] }
  0xb0   : > { %v2202_v39 = vpack.c.bf16 %v576_v38, %v573_v37 }
  0xb1   : > { %1971 = vmatmul.mubr.f32.vlgmr.msra.gmra.mrb[0].mxu0 %v365_v34  ;;  %v2200_v34 = vpack.c.bf16 %v569_v32, %v566_v31 }
  0xb2   : > { %654 = vmatprep.mubr.f32.mxu0 %v2686_v1  ;;  %2185 = vmatpush1.bf16.msra.mxu0 %v2184_v42  ;;  %v574_v42 = vld [vmem:[#allocation7 + $0x100] sm:$0xff] }
  0xb3   : > { %2187 = vmatprep.subr.bf16.mxu0 %v2186_v47  ;;  %v2234_v45 = vpack.c.bf16 %v577_v44, %v574_v42  ;;  %v582_v47 = vld [vmem:[#allocation7 + $0x140] sm:$0xff] }
  0xb4   : > { %v2206_v48 = vpack.c.bf16 %v582_v47, %v579_v46 }
  0xb6   : > { %2189 = vmatpush1.bf16.msra.mxu0 %v2188_v49  ;;  %v578_v49 = vld [vmem:[#allocation7 + $0x120] sm:$0xff] }
  0xb7   : > { %2191 = vmatprep.subr.bf16.mxu0 %v2190_v12 }
  0xba   : > { %2193 = vmatpush1.bf16.msra.mxu0 %v2192_v16 }
  0xbb   : > { %2195 = vmatprep.subr.bf16.mxu0 %v2194_v21 }
  0xbe   : > { %2197 = vmatpush1.bf16.msra.mxu0 %v2196_v25 }
  0xbf   : > { %2199 = vmatprep.subr.bf16.mxu0 %v2198_v30 }
  0xc2   : > { %2201 = vmatpush1.bf16.msra.mxu0 %v2200_v34 }
  0xc3   : > { %2203 = vmatprep.subr.bf16.mxu0 %v2202_v39 }
 0x184   : > { %v432_v53 = vpop.f32.mrb[0].mxu0 }
 0x185   : > { %v436_v54 = vmul.f32 0.015625, %v432_v53  ;;  %v1972_v55 = vpop.f32.mrb[1].mxu0  ;;  %v580_v53 = vld [vmem:[#allocation7 + $0x130] sm:$0xff] }
 0x186   : > { %v583_v55 = vld [vmem:[#allocation7 + $0x148] sm:$0xff] }
 0x187   : > { %v440_v56 = vrot.slane %v436_v54, %v439_v52  ;;  %v2208_v54 = vpack.c.bf16 %v581_v50, %v578_v49 }
 0x189   : > { %v2981_v57 = vsub.f32 %v2956_v10, %v440_v56  ;;  %v2984_v58 = vsub.f32 %v2958_v11, %v440_v56  ;;  %v2238_v56 = vpack.c.bf16 %v583_v55, %v580_v53 }
 0x18b   : > { %v443_v59 = vmul.f32 %v2981_v57, %v2981_v57  ;;  %v444_v60 = vmul.f32 %v2984_v58, %v2984_v58 }
 0x18d   : > { %v445_v61 = vadd.f32 %v444_v60, %v443_v59  ;;  %v585_v59 = vld [vmem:[#allocation7 + $0x158] sm:$0xff]  ;;  %v588_v60 = vld [vmem:[#allocation7 + $0x170] sm:$0xff] }
 0x18f   : > { %v446_v62 = vrot.slane %v445_v61, 4 }
 0x191   : > { %v447_v63 = vadd.f32 %v446_v62, %v445_v61  ;;  %v584_v61 = vld [vmem:[#allocation7 + $0x150] sm:$0xff]  ;;  %v2210_v62 = vpack.c.bf16 %v588_v60, %v585_v59 }
 0x193   : > { %v448_v0 = vrot.slane %v447_v63, 2 }
 0x195   : > { %v449_v2 = vadd.f32 %v448_v0, %v447_v63  ;;  %v587_v63 = vld [vmem:[#allocation7 + $0x168] sm:$0xff]  ;;  %v586_v0 = vld [vmem:[#allocation7 + $0x160] sm:$0xff] }
 0x196   : > { %v2212_v3 = vpack.c.bf16 %v587_v63, %v584_v61 }
 0x197   : > { %v450_v5 = vrot.slane %v449_v2, 1 }
 0x199   : > { %v451_v6 = vadd.f32 %v450_v5, %v449_v2  ;;  %v589_v2 = vld [vmem:[#allocation7 + $0x178] sm:$0xff] }
 0x19a   : > { %v2242_v4 = vpack.c.bf16 %v589_v2, %v586_v0 }
 0x19b   : > { %2006 = vmatmul.mubr.f32.vlgmr.msra.gmra.mrb[0].mxu1 %v451_v6 }
 0x19c   : > { %2217 = vmatpush3.bf16.msra.mxu1 %v2214_v43  ;;  %v2204_v43 = vpack.c.bf16 %v575_v41, %v572_v40 }
 0x19d   : > { %2219 = vmatprep.subr.bf16.mxu1 %v2218_v7 }
 0x19e   : > { %2205 = vmatpush1.bf16.msra.mxu0 %v2204_v43 }
 0x19f   : > { %2207 = vmatprep.subr.bf16.mxu0 %v2206_v48 }
 0x1a0   : > { %2221 = vmatpush3.bf16.msra.mxu1 %v2218_v7 }
 0x1a1   : > { %2223 = vmatprep.subr.bf16.mxu1 %v2222_v18 }
 0x1a2   : > { %2209 = vmatpush1.bf16.msra.mxu0 %v2208_v54 }
 0x1a3   : > { %2211 = vmatprep.subr.bf16.mxu0 %v2210_v62 }
 0x1a4   : > { %2225 = vmatpush3.bf16.msra.mxu1 %v2222_v18 }
 0x1a5   : > { %2227 = vmatprep.subr.bf16.mxu1 %v2226_v27 }
 0x1a6   : > { %2213 = vmatpush1.bf16.msra.mxu0 %v2212_v3 }
 0x1a8   : > { %2229 = vmatpush3.bf16.msra.mxu1 %v2226_v27 }
 0x1a9   : > { %2231 = vmatprep.subr.bf16.mxu1 %v2230_v36 }
 0x1ac   : > { %2233 = vmatpush3.bf16.msra.mxu1 %v2230_v36 }
 0x1ad   : > { %2235 = vmatprep.subr.bf16.mxu1 %v2234_v45 }
 0x1b0   : > { %2237 = vmatpush3.bf16.msra.mxu1 %v2234_v45 }
 0x1b1   : > { %2239 = vmatprep.subr.bf16.mxu1 %v2238_v56 }
 0x1b4   : > { %2241 = vmatpush3.bf16.msra.mxu1 %v2238_v56 }
 0x1b5   : > { %2243 = vmatprep.subr.bf16.mxu1 %v2242_v4 }
 0x1b8   : > { %2245 = vmatpush3.bf16.msra.mxu1 %v2242_v4 }
 0x26e   : > { %v518_v5 = vpop.f32.mrb[0].mxu1 }
 0x26f   : > { %v522_v6 = vmul.f32 0.015625, %v518_v5  ;;  %v2007_v7 = vpop.f32.mrb[1].mxu1 }
 0x271   : > { %v523_v8 = vadd.f32 1e-05, %v522_v6 }
 0x273   : > { %2452 = vrsqrt.f32 %v523_v8 }
 0x27d   : > { %v2453_v12 = vpop.eup %2452 }
 0x27e   : > { %v526_v13 = vmul.f32 %v2453_v12, %v525_v9 }
 0x280   : > { %v530_v14 = vrot.slane %v526_v13, %v439_v52 }
 0x282   : > { %v531_v16 = vmul.f32 %v530_v14, %v2981_v57  ;;  %v532_v17 = vmul.f32 %v530_v14, %v2984_v58 }
 0x284   : > { %v540_v18 = vadd.f32 %v1803_v15, %v531_v16  ;;  %v541_v19 = vadd.f32 %v1803_v15, %v532_v17 }
 0x286   : > { %655 = vmatmul.mubr.f32.vlgmr.msra.gmra.mrb[2].mxu0 %v540_v18  ;;  %2040 = vmatprep.mubr.f32.mxu1 %v540_v18 }
 0x287   : > { %2041 = vmatmul.mubr.f32.vlgmr.msra.gmra.mrb[2].mxu1 %v541_v19  ;;  %660 = vmatprep.mubr.f32.mxu0 %v2686_v1 }
 0x28a   : > { %661 = vmatmul.mubr.f32.gmra.mrb[4].mxu0 %v541_v19 }
 0x359   : > { %v3001_v20 = vpop.f32.mrb[2].mxu0 }
 0x35a   : > { %v658_v51 = vpop.f32.mrb[3].mxu0  ;;  %v2042_v52 = vpop.f32.mrb[2].mxu1  ;;  %2047 = vmatprep.mubr.msk.f32.mxu1 %vm742_vm1, %v3001_v20 }
 0x35b   : > { %v733_v21 = vpop.f32.mrb[3].mxu1 }
 0x35c   : > { %v2252_v57 = vpack.c.bf16 %v2042_v52, %v733_v21  ;;  %v3005_v22 = vpack.i.bf16 %v2042_v52, %v733_v21 }
 0x35d   : > { %v3007_v58 = vpop.f32.mrb[4].mxu0 }
 0x35e   : > { %v664_v23 = vpop.f32.mrb[5].mxu0 }
 0x35f   : > { %v2246_v24 = vpack.c.bf16 %v664_v23, %v658_v51  ;;  %v3015_v25 = vpack.i.bf16 %v664_v23, %v658_v51 }
 0x361   : > { %2408 = vrot.lane.b32.xlu1 %v3015_v25, %s2687_s19  ;;  %2248 = vmatprep.subr.msk.bf16.mxu1 %vm3011_vm2, %v2246_v24 }
 0x362   : > { %2251 = vmatpush3.bf16.xpose.msk.msra.mxu1 %vm3011_vm2, %v2246_v24 }
 0x363   : > { %2253 = vmatprep.subr.bf16.mxu1 %v2252_v57 }
 0x365   : > { %2413 = vrot.lane.b32.xlu1 %v3015_v25, %s2688_s14 }
 0x369   : > { %936 = vrot.lane.b32.xlu1 %v3007_v58, %s2687_s19  ;;  %2048 = vmatmul.mubr.msk.f32.vlgmr.msra.gmra.mrb[4].mxu1 %vm742_vm1, %v3007_v58 }
 0x36a   : > { %2255 = vmatpush3.bf16.msra.mxu1 %v2252_v57 }
 0x36d   : > { %1136 = vrot.lane.b32.xlu1 %v3001_v20, %s2688_s14 }
 0x371   : > { %1138 = vrot.lane.b32.xlu1 %v3007_v58, %s2688_s14 }
 0x375   : > { %2418 = vrot.lane.b32.xlu1 %v3005_v22, %s2688_s14 }
 0x3d3   : > { %v2409_v26 = vpop.permute.xlu1 %2408 }
 0x3d4   : > { %v2411_v27 = vunpack.i.h.bf16 %v2409_v26  ;;  %v2410_v28 = vunpack.i.l.bf16 %v2409_v26 }
 0x3d6   : > { %v2256_v29 = vpack.c.bf16 %v2411_v27, %v2410_v28 }
 0x3d7   : > { %v2414_v34 = vpop.permute.xlu1 %2413 }
 0x3d8   : > { %2258 = vmatprep.subr.msk.bf16.mxu1 %vm3011_vm2, %v2256_v29  ;;  %v2416_v45 = vunpack.i.h.bf16 %v2414_v34  ;;  %v2415_v46 = vunpack.i.l.bf16 %v2414_v34 }
 0x3da   : > { %v2266_v48 = vpack.c.bf16 %v2416_v45, %v2415_v46 }
 0x3db   : > { %v937_v37 = vpop.permute.xlu1 %936 }
 0x3df   : > { %v1137_v42 = vpop.permute.xlu1 %1136 }
 0x3e3   : > { %v1139_v44 = vpop.permute.xlu1 %1138 }
 0x3e7   : > { %v2419_v50 = vpop.permute.xlu1 %2418 }
 0x3e8   : > { %v2421_v53 = vunpack.i.h.bf16 %v2419_v50  ;;  %v2420_v54 = vunpack.i.l.bf16 %v2419_v50 }
 0x3ea   : > { %v2272_v55 = vpack.c.bf16 %v2421_v53, %v2420_v54 }
 0x43c   : > { %v2049_v30 = vpop.f32.mrb[4].mxu1 }
 0x43d   : > { %v821_v31 = vpop.f32.mrb[5].mxu1  ;;  %v834_v33 = vsel %vm830_vm3, %v2049_v30, -inf }
 0x43e   : > { %v831_v32 = vsel %vm830_vm3, %v821_v31, -inf }
 0x43f   : > { %832 = vmax.xlane.f32.xlu0 %v831_v32 }
 0x443   : > { %835 = vmax.xlane.f32.xlu0 %v834_v33 }
 0x459   : > { %934 = vrot.lane.b32.xlu0 %v3001_v20, %s2687_s19 }
 0x4cc   : > { %v833_v35 = vpop.xlane.xlu0 %832 }
 0x4cd   : > { %v837_v36 = vsub.f32 %v821_v31, %v833_v35 }
 0x4cf   : > { %v839_v38 = vmul.f32 1.442695, %v837_v36 }
 0x4d0   : > { %v836_v39 = vpop.xlane.xlu0 %835 }
 0x4d1   : > { %2454 = vpow2.f32 %v839_v38  ;;  %v838_v40 = vsub.f32 %v2049_v30, %v836_v39 }
 0x4d3   : > { %v841_v41 = vmul.f32 1.442695, %v838_v40 }
 0x4d4   : > { %v935_v49 = vpop.permute.xlu0 %934 }
 0x4d5   : > { %2456 = vpow2.f32 %v841_v41 }
 0x4db   : > { %v3041_v43 = vpop.eup %2454 }
 0x4dc   : > { %2054 = vmatprep.mubr.msk.f32.mxu1 %vm830_vm3, %v3041_v43 }
 0x4df   : > { %v3045_v47 = vpop.eup %2456 }
 0x4e0   : > { %2055 = vmatmul.mubr.msk.f32.vlgmr.msra.gmra.mrb[6].mxu1 %vm830_vm3, %v3045_v47 }
 0x4e1   : > { %2261 = vmatpush3.bf16.xpose.msk.msra.mxu1 %vm3011_vm2, %v2256_v29  ;;  %2061 = vmatprep.mubr.msk.f32.mxu1 %vm742_vm1, %v935_v49 }
 0x4e2   : > { %2268 = vmatprep.subr.msk.bf16.mxu1 %vm3011_vm2, %v2266_v48 }
 0x4e8   : > { %2062 = vmatmul.mubr.msk.f32.vlgmr.msra.gmra.mrb[8].mxu1 %vm742_vm1, %v937_v37 }
 0x4e9   : > { %2271 = vmatpush3.bf16.xpose.msk.msra.mxu1 %vm3011_vm2, %v2266_v48  ;;  %2075 = vmatprep.mubr.msk.f32.mxu1 %vm742_vm1, %v1137_v42 }
 0x4ea   : > { %2273 = vmatprep.subr.bf16.mxu1 %v2272_v55 }
 0x4f0   : > { %2076 = vmatmul.mubr.msk.f32.vlgmr.msra.gmra.mrb[10].mxu1 %vm742_vm1, %v1139_v44 }
 0x4f1   : > { %2275 = vmatpush3.bf16.msra.mxu1 %v2272_v55 }
 0x5b3   : > { %v3059_v56 = vpop.f32.mrb[6].mxu1 }
 0x5b4   : > { %v3061_v59 = vpop.f32.mrb[7].mxu1 }
 0x5bb   : > { %v2063_v60 = vpop.f32.mrb[8].mxu1 }
 0x5bc   : > { %v1016_v61 = vpop.f32.mrb[9].mxu1  ;;  %v1028_v3 = vsel %vm830_vm3, %v2063_v60, -inf }
 0x5bd   : > { %v1025_v4 = vsel %vm830_vm3, %v1016_v61, -inf }
 0x5c3   : > { %v2077_v62 = vpop.f32.mrb[10].mxu1 }
 0x5c4   : > { %v1218_v63 = vpop.f32.mrb[11].mxu1  ;;  %v1230_v0 = vsel %vm830_vm3, %v2077_v62, -inf }
 0x5c5   : > { %1231 = vmax.xlane.f32.xlu0 %v1230_v0  ;;  %v1227_v2 = vsel %vm830_vm3, %v1218_v63, -inf }
 0x5c6   : > { %1228 = vmax.xlane.f32.xlu1 %v1227_v2 }
 0x5d7   : > { %1336 = vrot.lane.b32.xlu1 %v3001_v20, %s2689_s8 }
 0x5db   : > { %2423 = vrot.lane.b32.xlu0 %v3015_v25, %s2689_s8  ;;  %1338 = vrot.lane.b32.xlu1 %v3007_v58, %s2689_s8 }
 0x5fa   : > { %1029 = vmax.xlane.f32.xlu0 %v1028_v3 }
 0x5ff   : > { %1026 = vmax.xlane.f32.xlu1 %v1025_v4 }
 0x652   : > { %v1232_v5 = vpop.xlane.xlu0 %1231 }
 0x653   : > { %v1234_v6 = vsub.f32 %v2077_v62, %v1232_v5  ;;  %v1229_v7 = vpop.xlane.xlu1 %1228 }
 0x654   : > { %v1233_v8 = vsub.f32 %v1218_v63, %v1229_v7 }
 0x655   : > { %v1237_v9 = vmul.f32 1.442695, %v1234_v6 }
 0x656   : > { %v1235_v12 = vmul.f32 1.442695, %v1233_v8  ;;  %v2424_v13 = vpop.permute.xlu0 %2423  ;;  %v1569_v8 = vld [vmem:[#allocation8 + $0x8] sm:$0xff] }
 0x657   : > { %v2426_v14 = vunpack.i.h.bf16 %v2424_v13  ;;  %v2425_v15 = vunpack.i.l.bf16 %v2424_v13  ;;  %v1337_v19 = vpop.permute.xlu1 %1336 }
 0x658   : > { %2458 = vpow2.f32 %v1235_v12  ;;  %v1571_v12 = vld [vmem:[#allocation8 + $0x18] sm:$0xff] }
 0x659   : > { %2460 = vpow2.f32 %v1237_v9  ;;  %v2276_v16 = vpack.c.bf16 %v2426_v14, %v2425_v15  ;;  %v1570_v9 = vld [vmem:[#allocation8 + $0x10] sm:$0xff]  ;;  %v1572_v14 = vld [vmem:[#allocation8 + $0x20] sm:$0xff]  ;;  %v1573_v15 = vld [vmem:[#allocation8 + $0x28] sm:$0xff] }
 0x65a   : > { %v2290_v13 = vpack.c.bf16 %v1571_v12, %v1570_v9 }
 0x65b   : > { %2278 = vmatprep.subr.msk.bf16.mxu1 %vm3011_vm2, %v2276_v16  ;;  %v1339_v20 = vpop.permute.xlu1 %1338 }
 0x662   : > { %v2459_v17 = vpop.eup %2458 }
 0x663   : > { %v2461_v18 = vpop.eup %2460  ;;  %2082 = vmatprep.mubr.msk.f32.mxu1 %vm830_vm3, %v2459_v17  ;;  %v1239_v34 = vsel %vm830_vm3, %v2459_v17, 0.0  ;;  %v1574_v17 = vld [vmem:[#allocation8 + $0x30] sm:$0xff] }
 0x664   : > { %2083 = vmatmul.mubr.msk.f32.vlgmr.msra.gmra.mrb[12].mxu1 %vm830_vm3, %v2461_v18  ;;  %v1242_v33 = vsel %vm830_vm3, %v2461_v18, 0.0  ;;  %v1575_v18 = vld [vmem:[#allocation8 + $0x38] sm:$0xff] }
 0x665   : > { %2281 = vmatpush3.bf16.xpose.msk.msra.mxu1 %vm3011_vm2, %v2276_v16  ;;  %2089 = vmatprep.mubr.msk.f32.mxu1 %vm742_vm1, %v1337_v19  ;;  %v2294_v16 = vpack.c.bf16 %v1573_v15, %v1572_v14  ;;  %v2298_v19 = vpack.c.bf16 %v1575_v18, %v1574_v17 }
 0x66c   : > { %2090 = vmatmul.mubr.msk.f32.vlgmr.msra.gmra.mrb[14].mxu1 %vm742_vm1, %v1339_v20  ;;  %v1576_v20 = vld [vmem:[#allocation8 + $0x40] sm:$0xff] }
 0x687   : > { %v1030_v27 = vpop.xlane.xlu0 %1029 }
 0x688   : > { %v1032_v28 = vsub.f32 %v2063_v60, %v1030_v27  ;;  %v846_v60 = vsel %vm830_vm3, %v3045_v47, 0.0  ;;  %v1568_v47 = vld [vmem:[#allocation8] sm:$0xff]  ;;  %v1582_v27 = vld [vmem:[#allocation8 + $0x70] sm:$0xff] }
 0x68a   : > { %v1035_v29 = vmul.f32 1.442695, %v1032_v28  ;;  %v1583_v28 = vld [vmem:[#allocation8 + $0x78] sm:$0xff] }
 0x68c   : > { %v1027_v51 = vpop.xlane.xlu1 %1026 }
 0x68d   : > { %v1031_v52 = vsub.f32 %v1016_v61, %v1027_v51  ;;  %v843_v61 = vsel %vm830_vm3, %v3041_v43, 0.0  ;;  %v2286_v43 = vpack.c.bf16 %v1569_v8, %v1568_v47  ;;  %v1577_v51 = vld [vmem:[#allocation8 + $0x48] sm:$0xff] }
 0x68f   : > { %v1033_v21 = vmul.f32 1.442695, %v1031_v52  ;;  %v2302_v52 = vpack.c.bf16 %v1577_v51, %v1576_v20 }
 0x691   : > { %2462 = vpow2.f32 %v1033_v21  ;;  %v1578_v21 = vld [vmem:[#allocation8 + $0x50] sm:$0xff] }
 0x692   : > { %2464 = vpow2.f32 %v1035_v29  ;;  %v2314_v29 = vpack.c.bf16 %v1583_v28, %v1582_v27 }
 0x69b   : > { %v2463_v57 = vpop.eup %2462 }
 0x69c   : > { %2068 = vmatprep.mubr.msk.f32.mxu0 %vm830_vm3, %v2463_v57  ;;  %v2465_v30 = vpop.eup %2464  ;;  %v1037_v31 = vsel %vm830_vm3, %v2463_v57, 0.0  ;;  %v1579_v57 = vld [vmem:[#allocation8 + $0x58] sm:$0xff] }
 0x69d   : > { %v1040_v32 = vsel %vm830_vm3, %v2465_v30, 0.0 }
 0x737   : > { %v3082_v58 = vpop.f32.mrb[12].mxu1 }
 0x738   : > { %v3084_v23 = vpop.f32.mrb[13].mxu1 }
 0x73f   : > { %v2091_v24 = vpop.f32.mrb[14].mxu1 }
 0x740   : > { %v1418_v25 = vpop.f32.mrb[15].mxu1  ;;  %v1430_v1 = vsel %vm830_vm3, %v2091_v24, -inf }
 0x741   : > { %1431 = vmax.xlane.f32.xlu1 %v1430_v1  ;;  %v1427_v26 = vsel %vm830_vm3, %v1418_v25, -inf }
 0x742   : > { %1428 = vmax.xlane.f32.xlu0 %v1427_v26 }
 0x752   : > { %2433 = vrot.lane.b32.xlu1 %v3005_v22, %s2689_s8 }
 0x758   : > { %2428 = vrot.lane.b32.xlu0 %v3005_v22, %s2687_s19 }
 0x776   : > { %1038 = vadd.xlane.f32.xlu1 %v1037_v31 }
 0x777   : > { %1041 = vadd.xlane.f32.xlu0 %v1040_v32 }
 0x77a   : > { %1243 = vadd.xlane.f32.xlu1 %v1242_v33 }
 0x77b   : > { %1240 = vadd.xlane.f32.xlu0 %v1239_v34 }
 0x7ce   : > { %v1432_v35 = vpop.xlane.xlu1 %1431 }
 0x7cf   : > { %v1434_v36 = vsub.f32 %v2091_v24, %v1432_v35  ;;  %v1429_v22 = vpop.xlane.xlu0 %1428  ;;  %v1581_v24 = vld [vmem:[#allocation8 + $0x68] sm:$0xff] }
 0x7d0   : > { %v1433_v37 = vsub.f32 %v1418_v25, %v1429_v22 }
 0x7d1   : > { %v1437_v38 = vmul.f32 1.442695, %v1434_v36 }
 0x7d2   : > { %v1435_v39 = vmul.f32 1.442695, %v1433_v37  ;;  %v2434_v40 = vpop.permute.xlu1 %2433 }
 0x7d3   : > { %2466 = vpow2.f32 %v1437_v38  ;;  %v2436_v41 = vunpack.i.h.bf16 %v2434_v40  ;;  %v2429_v42 = vpop.permute.xlu0 %2428  ;;  %v2435_v44 = vunpack.i.l.bf16 %v2434_v40 }
 0x7d4   : > { %2468 = vpow2.f32 %v1435_v39  ;;  %v2431_v45 = vunpack.i.h.bf16 %v2429_v42  ;;  %v2430_v46 = vunpack.i.l.bf16 %v2429_v42 }
 0x7d5   : > { %v2282_v49 = vpack.c.bf16 %v2436_v41, %v2435_v44 }
 0x7d6   : > { %v2262_v48 = vpack.c.bf16 %v2431_v45, %v2430_v46 }
 0x7d8   : > { %2263 = vmatprep.subr.bf16.mxu0 %v2262_v48 }
 0x7d9   : > { %2265 = vmatpush3.bf16.msra.mxu0 %v2262_v48 }
 0x7da   : > { %2283 = vmatprep.subr.bf16.mxu0 %v2282_v49 }
 0x7dc   : > { %2069 = vmatmul.mubr.msk.f32.vlgmr.msra.gmra.mrb[6].mxu0 %vm830_vm3, %v2465_v30 }
 0x7dd   : > { %v2467_v50 = vpop.eup %2466  ;;  %2285 = vmatpush3.bf16.msra.mxu0 %v2282_v49 }
 0x7de   : > { %v2469_v53 = vpop.eup %2468  ;;  %v1442_v54 = vsel %vm830_vm3, %v2467_v50, 0.0  ;;  %2287 = vmatprep.subr.bf16.mxu0 %v2286_v43 }
 0x7df   : > { %2096 = vmatprep.mubr.msk.f32.mxu0 %vm830_vm3, %v2469_v53  ;;  %1443 = vadd.xlane.f32.xlu1 %v1442_v54  ;;  %v1439_v55 = vsel %vm830_vm3, %v2469_v53, 0.0 }
 0x7e0   : > { %1440 = vadd.xlane.f32.xlu0 %v1439_v55  ;;  %2097 = vmatmul.mubr.msk.f32.vlgmr.msra.gmra.mrb[8].mxu0 %vm830_vm3, %v2467_v50 }
 0x7e1   : > { %2289 = vmatpush3.bf16.msra.mxu0 %v2286_v43 }
 0x7e2   : > { %2291 = vmatprep.subr.bf16.mxu0 %v2290_v13 }
 0x7e3   : > { %847 = vadd.xlane.f32.xlu1 %v846_v60 }
 0x7e4   : > { %844 = vadd.xlane.f32.xlu0 %v843_v61 }
 0x7e5   : > { %2293 = vmatpush3.bf16.msra.mxu0 %v2290_v13 }
 0x7e6   : > { %2295 = vmatprep.subr.bf16.mxu0 %v2294_v16 }
 0x7e9   : > { %2297 = vmatpush3.bf16.msra.mxu0 %v2294_v16 }
 0x7ea   : > { %2299 = vmatprep.subr.bf16.mxu0 %v2298_v19 }
 0x7ed   : > { %2301 = vmatpush3.bf16.msra.mxu0 %v2298_v19 }
 0x7ee   : > { %2303 = vmatprep.subr.bf16.mxu0 %v2302_v52 }
 0x7f1   : > { %2305 = vmatpush3.bf16.msra.mxu0 %v2302_v52 }
 0x803   : > { %v1039_v62 = vpop.xlane.xlu1 %1038 }
 0x804   : > { %v1042_v63 = vpop.xlane.xlu0 %1041 }
 0x807   : > { %v1244_v0 = vpop.xlane.xlu1 %1243 }
 0x808   : > { %2470 = vrcp.f32 %v1244_v0  ;;  %v1241_v2 = vpop.xlane.xlu0 %1240 }
 0x809   : > { %2472 = vrcp.f32 %v1241_v2 }
 0x80a   : > { %2474 = vrcp.f32 %v1042_v63 }
 0x80b   : > { %2476 = vrcp.f32 %v1039_v62 }
 0x812   : > { %v2471_v3 = vpop.eup %2470 }
 0x813   : > { %v2473_v4 = vpop.eup %2472  ;;  %v1335_v5 = vmul.f32 %v2471_v3, %v3082_v58  ;;  %v2306_v58 = vpack.c.bf16 %v1579_v57, %v1578_v21 }
 0x814   : > { %v1334_v6 = vmul.f32 %v2473_v4, %v3084_v23  ;;  %v1580_v23 = vld [vmem:[#allocation8 + $0x60] sm:$0xff]  ;;  %v2475_v30 = vpop.eup %2474 }
 0x815   : > { %2307 = vmatprep.subr.bf16.mxu0 %v2306_v58  ;;  %v2310_v1 = vpack.c.bf16 %v1581_v24, %v1580_v23  ;;  %v2477_v32 = vpop.eup %2476 }
 0x816   : > { %v2442_v7 = vpack.i.bf16 %v1335_v5, %v1334_v6  ;;  %2309 = vmatpush3.bf16.msra.mxu0 %v2306_v58 }
 0x817   : > { %2311 = vmatprep.subr.bf16.mxu0 %v2310_v1 }
 0x818   : > { %2443 = vrot.lane.b32.xlu1 %v2442_v7, %s2688_s14 }
 0x81a   : > { %2313 = vmatpush3.bf16.msra.mxu0 %v2310_v1 }
 0x81b   : > { %2315 = vmatprep.subr.bf16.mxu0 %v2314_v29 }
 0x81e   : > { %2317 = vmatpush3.bf16.msra.mxu0 %v2314_v29 }
 0x86c   : > { %v1444_v25 = vpop.xlane.xlu1 %1443 }
 0x86d   : > { %v1441_v26 = vpop.xlane.xlu0 %1440  ;;  %2478 = vrcp.f32 %v1444_v25 }
 0x86e   : > { %2480 = vrcp.f32 %v1441_v26 }
 0x870   : > { %v848_v44 = vpop.xlane.xlu1 %847 }
 0x871   : > { %v845_v45 = vpop.xlane.xlu0 %844  ;;  %2482 = vrcp.f32 %v848_v44 }
 0x872   : > { %2484 = vrcp.f32 %v845_v45 }
 0x877   : > { %v2479_v36 = vpop.eup %2478 }
 0x878   : > { %v2481_v38 = vpop.eup %2480 }
 0x87b   : > { %v2483_v46 = vpop.eup %2482 }
 0x87c   : > { %v2485_v48 = vpop.eup %2484  ;;  %v933_v60 = vmul.f32 %v2483_v46, %v3059_v56  ;;  %v1828_v56 = vld [vmem:[%s3177_s6] ss:$0 sm:$0xff] }
 0x87d   : > { %v932_v53 = vmul.f32 %v2485_v48, %v3061_v59  ;;  %v1667_v47 = vadd.f32 %v1828_v56, %v2958_v11  ;;  %v1666_v8 = vadd.f32 %v1828_v56, %v2956_v10 }
 0x88a   : > { %v2444_v49 = vpop.permute.xlu1 %2443 }
 0x88b   : > { %v2446_v63 = vunpack.i.h.bf16 %v2444_v49  ;;  %v2445_v0 = vunpack.i.l.bf16 %v2444_v49 }
 0x8af   : > { %v2070_v31 = vpop.f32.mrb[6].mxu0 }
 0x8b0   : > { %v1135_v33 = vmul.f32 %v2475_v30, %v2070_v31  ;;  %v1123_v34 = vpop.f32.mrb[7].mxu0 }
 0x8b1   : > { %v1134_v35 = vmul.f32 %v2477_v32, %v1123_v34 }
 0x8b3   : > { %v2437_v22 = vpack.i.bf16 %v1135_v33, %v1134_v35  ;;  %v2098_v37 = vpop.f32.mrb[8].mxu0 }
 0x8b4   : > { %v1535_v39 = vmul.f32 %v2479_v36, %v2098_v37  ;;  %v1523_v40 = vpop.f32.mrb[9].mxu0 }
 0x8b5   : > { %v1534_v41 = vmul.f32 %v2481_v38, %v1523_v40  ;;  %2438 = vrot.lane.b32.xlu0 %v2437_v22, %s2689_s8 }
 0x8b7   : > { %v2447_v42 = vpack.i.bf16 %v1535_v39, %v1534_v41 }
 0x8b9   : > { %2448 = vrot.lane.b32.xlu1 %v2447_v42, %s2687_s19 }
 0x927   : > { %v2439_v50 = vpop.permute.xlu0 %2438 }
 0x928   : > { %v2441_v54 = vunpack.i.h.bf16 %v2439_v50  ;;  %v2440_v55 = vunpack.i.l.bf16 %v2439_v50 }
 0x92a   : > { %v1560_v61 = vsel %vm742_vm1, %v932_v53, %v2440_v55  ;;  %v1561_v62 = vsel %vm742_vm1, %v933_v60, %v2441_v54 }
 0x92b   : > { %v2449_v2 = vpop.permute.xlu1 %2448  ;;  %v1563_v5 = vsel %vm1562_vm4, %v1560_v61, %v2445_v0  ;;  %v1564_v6 = vsel %vm1562_vm4, %v1561_v62, %v2446_v63 }
 0x92c   : > { %v2451_v3 = vunpack.i.h.bf16 %v2449_v2  ;;  %v2450_v4 = vunpack.i.l.bf16 %v2449_v2 }
 0x92e   : > { %v1566_v59 = vsel %vm1565_vm5, %v1563_v5, %v2450_v4  ;;  %v1567_v7 = vsel %vm1565_vm5, %v1564_v6, %v2451_v3 }
 0x92f   : > { %2131 = vmatprep.mubr.f32.mxu0 %v1566_v59 }
 0x930   : > { %2132 = vmatmul.mubr.f32.vlgmr.msra.gmra.mrb[10].mxu0 %v1567_v7 }
 0xa03   : > { %v2133_v9 = vpop.f32.mrb[10].mxu0 }
 0xa04   : > { %v1669_v43 = vadd.f32 %v2133_v9, %v1667_v47  ;;  %v1650_v12 = vpop.f32.mrb[11].mxu0 }
 0xa05   : > { %v1668_v11 = vadd.f32 %v1666_v8, %v1650_v12 }
 0xa06   : > { %1671 = vst [vmem:[%s340_s11 + $0x8] sm:$0xff] %v1669_v43 }
 0xa07   : > { %1670 = vst [vmem:[%s340_s11] sm:$0xff] %v1668_v11 }
 0xa08   : > { %2613 = shalt.err (!%p2610_p4)
}
 0xa09   : > { %s2614_s19 = scalar_lea.hbm %s3127_s30, 256  ;;  %s2618_s23 = scalar_lea.hbm %s3178_s7, 512 }
 0xa0a   : > { %p2615_p9 = scmp.ne.s32.totalorder %s3127_s30, %s2614_s19  ;;  %p2619_p8 = scmp.lt.u32.totalorder %s3127_s30, %s3178_s7 }
 0xa0b   : > { %p2620_p13 = scmp.lt.u32.totalorder %s2618_s23, %s2614_s19  ;;  %p2622_p10 = scmp.lt.u32.totalorder %s2614_s19, %s3127_s30 }
 0xa0c   : > { %p2616_p0 = pnand %p2615_p9, %p2881_p5 }
 0xa0d   : > { %p2621_p6 = por %p2620_p13, %p2619_p8 }
 0xa0e   : > { %p2617_p11 = pneg %p2616_p0 }
 0xa0f   : > { %p2623_p3 = por %p2622_p10, %p2621_p6 }
 0xa11   : > { %p2624_p7 = pnand %p2623_p3, %p2617_p11 }
 0xa13   : > { %2627 = shalt.err (!%p2624_p7)
}
 0xa14   : > { %s2691_s17 = smov 128   ;;  %s2692_s22 = smov 8  }
 0xa15   : > { %2332 = dma.vmem_to_hbm [thread:$0]  (%p2881_p5), %s3122_s12, 256, %s3127_s30, %s1673_s18, %s2691_s17, %s2691_s17, %s2692_s22  }
 0xa16 PF: > { %s3208_s3 = sld [smem:[#allocation15_spill]]  ;;  %s1701_s9 = sand.u32 1, %s2662_s24  }
 0xa17   : > { %p3210_p1 = scmp.ge.s32.totalorder %s2674_s27, 2  ;;  %s1702_s28 = scalar_lea.sflag [#allocation4], %s1701_s9 }
 0xa1c   : > { %p3209_p12 = scmp.ne.s32.totalorder %s3208_s3, 0 }
 0xa1e   : > { %p2349_p2 = pnand %p3210_p1, %p3209_p12 }
 0xa20   : > { %2657 = dma.done.wait (!%p2349_p2), %s1702_s28, 256  }
 0xa21   : > { %2659 = vsyncadd (!%p2349_p2), %s1702_s28, 4294967040  ;;  %p22_p4 = scmp.ge.s32.totalorder %s2846_s21, 4   ;;  %s3211_s24 = smov %s2666_s25 }
 0xa22   : > { %s3212_s25 = smov %s2670_s26  ;;  %s3213_s26 = smov %s2877_s13 }
 0xa23   : > { %s3214_s27 = smov %s2846_s21  ;;  %24 = sbr.rel (!%p22_p4) target bundleno = 9 (0x9), region = 105 }
 0xa2a   :  { %1707 = vsyncpa [#allocation3], 1 }
 0xa2b   :  { %1709 = vsyncpa [#allocation3 + $0x1], 1 }
 0xa2c   :  { %1710 = vsyncpa [#allocation6], 1 }
 0xa2d   :  { %1711 = vsyncpa [#allocation9], 1 }
 0xa2e   :  { %1712 = vsyncpa [#allocation4], 1 }
 0xa2f   :  { %1714 = vsyncpa [#allocation4 + $0x1], 1 }

</bundles_post_ra>
